<compile_context>
chip_gen: v5e
topology: v5e:2x2
jax: 0.10.0
libtpu: 0.0.40
codegen_flags: <defaults>
</compile_context>

<pallas_src>
from functools import partial

import jax
import jax.numpy as jnp
from jax import lax
from jax.experimental import pallas as pl
from jax.experimental.pallas import tpu as pltpu


# --------------------------------------------------------------------------- #
# Tiling helpers                                                               #
# --------------------------------------------------------------------------- #
def _vmem_capacity_bytes():
    try:
        return int(pltpu.get_tpu_info().vmem_capacity_bytes)
    except Exception:
        return 64 << 20   # conservative fallback (v7x per-TC VMEM)


def _pad_to_128(S):
    return max(128, ((S + 127) // 128) * 128)


def _pick_s_tile(Sp, max_cols=4096):
    """Largest multiple-of-128 divisor of Sp that is <= max_cols (Sp is 128-aligned)."""
    t = max(128, min(Sp, (max_cols // 128) * 128))
    while t >= 128:
        if Sp % t == 0:
            return t
        t -= 128
    return Sp


def _costvol_tiles(Sp, N, D, C, vmem_cap):
    """Pick (Dt, st, vmem_limit) for the cost-volume kernel against a VMEM budget."""
    if D % 8 == 0:
        Dt = 8                     # sublane-dense output stores
    elif D <= 8:
        Dt = D                     # full depth axis (== array dim, still legal)
    else:
        Dt = D                     # TODO(synk): pad D to a multiple of 8 for odd large D
    # bytes needed in VMEM per column of S (double-buffered inputs, dbl-buf output)
    per_col = 2 * (N * Dt * C * 2 + C * 2) + 2 * Dt * 4
    budget = min(vmem_cap // 3, 24 << 20)            # pipeline-buffer budget
    max_cols = max(128, (budget // per_col) // 128 * 128)
    st = _pick_s_tile(Sp, max_cols=max_cols)
    vmem_limit = int(min(vmem_cap * 3 // 4,
                         max(32 << 20, per_col * st + (8 << 20))))
    return Dt, st, vmem_limit


# --------------------------------------------------------------------------- #
# FNET (synthetic): 4x4 stride-4 "patchify" conv + ReLU, matmul done in Pallas #
# TODO(synk): the real MaGNet FNET is an args-configured EfficientNet encoder/ #
# decoder; it is replaced here by a single patchify conv (same 1/4-res output).#
# --------------------------------------------------------------------------- #
def _fnet_matmul_kernel(x_ref, w_ref, b_ref, o_ref):
    # w: (Cf, K) bf16, x: (K, St) bf16 -> (Cf, St) f32 on the MXU.
    acc = jnp.dot(w_ref[...], x_ref[0], preferred_element_type=jnp.float32)
    acc = acc + b_ref[...]                       # (Cf, 1) broadcast over lanes
    o_ref[0] = jnp.maximum(acc, 0.0).astype(o_ref.dtype)


def fnet_forward(imgs, w_conv, b_conv, patch=4):
    # imgs: (Bt, 3, H, W) -> (Bt, C_feat, H//patch, W//patch), bf16
    Bt, Cin, H, W = imgs.shape
    H4, W4 = H // patch, W // patch
    Cf = w_conv.shape[0]
    K = Cin * patch * patch
    S = H4 * W4
    Sp = _pad_to_128(S)

    # im2col with the spatial axis last (lane axis of the matmul output), bf16.
    x = imgs.astype(jnp.bfloat16).reshape(Bt, Cin, H4, patch, W4, patch)
    x = x.transpose(0, 1, 3, 5, 2, 4).reshape(Bt, K, S)          # (Bt, K, S)
    if Sp != S:
        x = jnp.pad(x, ((0, 0), (0, 0), (0, Sp - S)))
    w = w_conv.reshape(Cf, K).astype(jnp.bfloat16)               # (Cf, K)
    b = b_conv.reshape(Cf, 1).astype(jnp.float32)                # (Cf, 1)

    st = _pick_s_tile(Sp)
    out = pl.pallas_call(
        _fnet_matmul_kernel,
        out_shape=jax.ShapeDtypeStruct((Bt, Cf, Sp), jnp.bfloat16),
        grid=(Bt, Sp // st),
        in_specs=[
            pl.BlockSpec((1, K, st), lambda i, s: (i, 0, s)),
            pl.BlockSpec((Cf, K), lambda i, s: (0, 0)),
            pl.BlockSpec((Cf, 1), lambda i, s: (0, 0)),
        ],
        out_specs=pl.BlockSpec((1, Cf, st), lambda i, s: (i, 0, s)),
        compiler_params=pltpu.CompilerParams(
            dimension_semantics=("parallel", "parallel")),
    )(x, w, b)

    # Already channel-major: slice the pad off, fold S back into (H4, W4).
    return out[:, :, :S].reshape(Bt, Cf, H4, W4)


# --------------------------------------------------------------------------- #
# Homography plane-sweep warping glue (plain JAX; gather-heavy grid_sample)    #
# TODO(synk): gather-based bilinear grid_sample has no clean Pallas equivalent #
# at these shapes; longer term it should be fused into the cost-volume kernel  #
# (manual DMA gather per S-tile) so the (B,N,D,C,S) tensor never hits HBM.     #
# --------------------------------------------------------------------------- #
def _bilinear_sample_hw(feat, u, v):
    # feat: (C, H, W);  u, v: (H, W) pixel coords -> (C, H, W); zeros OOB
    C, H, W = feat.shape
    u0 = jnp.floor(u)
    v0 = jnp.floor(v)
    du = u - u0
    dv = v - v0

    def g(iu, iv):
        inb = ((iu >= 0) & (iu <= W - 1) & (iv >= 0) & (iv <= H - 1)).astype(feat.dtype)
        iuc = jnp.clip(iu, 0, W - 1).astype(jnp.int32)
        ivc = jnp.clip(iv, 0, H - 1).astype(jnp.int32)
        return feat[:, ivc, iuc] * inb[None]

    w00 = ((1.0 - du) * (1.0 - dv))[None]
    w01 = (du * (1.0 - dv))[None]
    w10 = ((1.0 - du) * dv)[None]
    w11 = (du * dv)[None]
    return (g(u0, v0) * w00 + g(u0 + 1.0, v0) * w01 +
            g(u0, v0 + 1.0) * w10 + g(u0 + 1.0, v0 + 1.0) * w11)


def warp_nghbr_feats(nghbr_feat, d_center, Rs, ts, K, out_dtype=jnp.bfloat16):
    # nghbr_feat: (B, N, C, H, W); d_center: (B, D, H, W)
    # Rs: (B, N, 3, 3); ts: (B, N, 3); K: (B, 3, 3) at feature (1/4) resolution
    # Returns warped features in natural (B, N, D, C, H, W) layout, bf16.
    B, N, C, H, W = nghbr_feat.shape

    jj, ii = jnp.meshgrid(jnp.arange(W, dtype=jnp.float32),
                          jnp.arange(H, dtype=jnp.float32), indexing="xy")
    pix = jnp.stack([jj, ii, jnp.ones_like(jj)], axis=0)        # (3, H, W)

    K_inv = jnp.linalg.inv(K)                                    # (B, 3, 3)
    rays = jnp.einsum("bxy,yhw->bxhw", K_inv, pix)               # (B, 3, H, W)

    # Pre-compose the projection: p = d * (K R K^-1 pix) + K t.
    KR = jnp.einsum("bxy,bnyz->bnxz", K, Rs)                     # (B, N, 3, 3)
    Kt = jnp.einsum("bxy,bny->bnx", K, ts)                       # (B, N, 3)
    KRrays = jnp.einsum("bnxy,byhw->bnxhw", KR, rays)            # (B, N, 3, H, W)
    p = (d_center[:, None, :, None] * KRrays[:, :, None]
         + Kt[:, :, None, :, None, None])                        # (B, N, D, 3, H, W)

    eps = 1e-6
    z = p[:, :, :, 2]
    u = p[:, :, :, 0] / jnp.maximum(z, eps)                      # (B, N, D, H, W)
    v = p[:, :, :, 1] / jnp.maximum(z, eps)
    front = (z > eps).astype(jnp.float32)

    # vmap over B, N, D so the gather output lands directly in
    # (B, N, D, C, H, W) -- the layout the cost-volume kernel consumes.
    sample_d = jax.vmap(_bilinear_sample_hw, in_axes=(None, 0, 0))   # over D
    sample_nd = jax.vmap(sample_d, in_axes=(0, 0, 0))                # over N
    sample_bnd = jax.vmap(sample_nd, in_axes=(0, 0, 0))              # over B
    sampled = sample_bnd(nghbr_feat, u, v)                           # (B,N,D,C,H,W)
    return (sampled * front[:, :, :, None]).astype(out_dtype)


# --------------------------------------------------------------------------- #
# Cost-volume correlation + masked neighbor average (Pallas kernel)            #
# --------------------------------------------------------------------------- #
def _costvol_kernel(w_ref, ref_ref, wrp_ref, out_ref, *, N, Dt):
    # w_ref:   (B*N,) f32 in SMEM -- valid * (1/den) * (1/C) already folded in
    # ref_ref: (1, C, St) bf16
    # wrp_ref: (1, N, Dt, C, St) bf16
    # out_ref: (1, Dt, St) f32
    b = pl.program_id(0)
    r = ref_ref[0]                                   # (C, St) bf16
    st = out_ref.shape[-1]

    def n_body(n, acc):
        wgt = w_ref[b * N + n]                       # f32 scalar from SMEM
        rows = []
        for d in range(Dt):                          # short static unroll over depths
            prod = r * wrp_ref[0, n, d]              # (C, St) bf16 product (bf16 VALU)
            rows.append(jnp.sum(prod.astype(jnp.float32), axis=0, keepdims=True))
        corr = jnp.concatenate(rows, axis=0)         # (Dt, St) f32
        return acc + wgt * corr

    acc0 = jnp.zeros((Dt, st), jnp.float32)
    acc = lax.fori_loop(0, N, n_body, acc0, unroll=True)
    out_ref[0] = acc                                 # sublane/lane-dense store


def est_costvolume_F(d_center, ref_feat, nghbr_feat, Rs, ts, is_valid, cam_intrins):
    # ref_feat: (B, C, H4, W4); nghbr_feat: (B, N, C, H4, W4)
    B, C, H, W = ref_feat.shape
    N = nghbr_feat.shape[1]
    D = d_center.shape[1]
    S = H * W
    Sp = _pad_to_128(S)

    # Natural-layout warped features, bf16, no HBM transpose.
    warped = warp_nghbr_feats(nghbr_feat, d_center, Rs, ts, cam_intrins)  # (B,N,D,C,H,W)
    warped = warped.reshape(B, N, D, C, S)                                # contiguous
    ref_flat = ref_feat.reshape(B, C, S).astype(jnp.bfloat16)
    if Sp != S:                                       # keep every store lane-dense
        warped = jnp.pad(warped, ((0, 0), (0, 0), (0, 0), (0, 0), (0, Sp - S)))
        ref_flat = jnp.pad(ref_flat, ((0, 0), (0, 0), (0, Sp - S)))

    # Fold mask, masked-mean denominator and 1/C channel mean into one weight,
    # flattened to 1D to avoid 2D SMEM padding.
    valid = is_valid.astype(jnp.float32)                                  # (B, N)
    inv_den = 1.0 / jnp.maximum(valid.sum(axis=1, keepdims=True), 1.0)    # (B, 1)
    weight = (valid * inv_den * (1.0 / C)).reshape(-1).astype(jnp.float32)  # (B*N,)

    Dt, st, vmem_limit = _costvol_tiles(Sp, N, D, C, _vmem_capacity_bytes())
    grid = (B, Sp // st, D // Dt)   # fully parallel: N reduced inside the kernel

    out = pl.pallas_call(
        partial(_costvol_kernel, N=N, Dt=Dt),
        out_shape=jax.ShapeDtypeStruct((B, D, Sp), jnp.float32),
        grid=grid,
        in_specs=[
            pl.BlockSpec(memory_space=pltpu.MemorySpace.SMEM),
            pl.BlockSpec((1, C, st), lambda b, si, di: (b, 0, si)),
            pl.BlockSpec((1, N, Dt, C, st), lambda b, si, di: (b, 0, di, 0, si)),
        ],
        out_specs=pl.BlockSpec((1, Dt, st), lambda b, si, di: (b, di, si)),
        compiler_params=pltpu.CompilerParams(
            dimension_semantics=("parallel", "parallel", "parallel"),
            vmem_limit_bytes=vmem_limit),
    )(weight, ref_flat, warped)

    return out[:, :, :S].reshape(B, D, H, W)


# --------------------------------------------------------------------------- #
# MAGNET_F forward                                                             #
# --------------------------------------------------------------------------- #
def magnet_f_forward(params, ref_img, nghbr_imgs, nghbr_poses, is_valid,
                     cam_intrins, d_center):
    B = ref_img.shape[0]
    imgs = jnp.concatenate([ref_img, nghbr_imgs], axis=0)       # (B + B*N, 3, H, W)
    feat_4 = fnet_forward(imgs, params["w_conv"], params["b_conv"])
    ref_feat_4 = feat_4[:B]
    nghbr_feat_4 = feat_4[B:]
    N = nghbr_poses.shape[1]
    nghbr_feat_4 = nghbr_feat_4.reshape(B, N, *nghbr_feat_4.shape[1:])

    Rs_src = nghbr_poses[:, :, :3, :3]
    ts_src = nghbr_poses[:, :, :3, 3]
    return est_costvolume_F(d_center, ref_feat_4, nghbr_feat_4,
                            Rs_src, ts_src, is_valid, cam_intrins)


if __name__ == "__main__":
    key = jax.random.PRNGKey(0)
    B, N, H, W = 2, 2, 16, 16
    patch = 4
    H4, W4 = H // patch, W // patch
    C_feat, D = 8, 8

    k1, k2, k3, k4, k5 = jax.random.split(key, 5)

    params = {
        "w_conv": 0.1 * jax.random.normal(k1, (C_feat, 3, patch, patch), jnp.float32),
        "b_conv": 0.01 * jnp.arange(C_feat, dtype=jnp.float32),
    }

    ref_img = jax.random.normal(k2, (B, 3, H, W), jnp.float32)
    nghbr_imgs = jax.random.normal(k3, (B * N, 3, H, W), jnp.float32)

    # relative poses ref->nghbr: identity rotation + small translation
    eye = jnp.eye(4, dtype=jnp.float32)
    poses = jnp.tile(eye[None, None], (B, N, 1, 1))
    t_small = 0.05 * jax.random.normal(k4, (B, N, 3), jnp.float32)
    poses = poses.at[:, :, :3, 3].set(t_small)

    is_valid = jnp.ones((B, N), jnp.float32)

    # intrinsics at feature (1/4) resolution
    Kmat = jnp.array([[4.0, 0.0, (W4 - 1) / 2.0],
                      [0.0, 4.0, (H4 - 1) / 2.0],
                      [0.0, 0.0, 1.0]], jnp.float32)
    cam_intrins = jnp.tile(Kmat[None], (B, 1, 1))

    # per-pixel depth candidates (B, D, H4, W4), positive
    d_center = 2.0 + 2.0 * jax.random.uniform(k5, (B, D, H4, W4), jnp.float32)

    fwd = jax.jit(magnet_f_forward)
    cost = fwd(params, ref_img, nghbr_imgs, poses, is_valid, cam_intrins, d_center)
    cost = jax.block_until_ready(cost)

    assert cost.shape == (B, D, H4, W4), cost.shape
    assert bool(jnp.isfinite(cost).all())
    print("KERNEL_OK")
</pallas_src>

<mosaic_0001>
module attributes {stable_mosaic.version = 11 : i64} {
  func.func @_fnet_matmul_kernel(%arg0: i32, %arg1: i32, %arg2: memref<1x48x128xbf16, #tpu.memory_space<vmem>>, %arg3: memref<8x48xbf16, #tpu.memory_space<vmem>>, %arg4: memref<8x1xf32, #tpu.memory_space<vmem>>, %arg5: memref<1x8x128xbf16, #tpu.memory_space<vmem>>) attributes {dimension_semantics = [#tpu.dimension_semantics<parallel>, #tpu.dimension_semantics<parallel>], iteration_bounds = array<i64: 6, 1>, scalar_prefetch = 0 : i64, scratch_operands = 0 : i64, tpu.core_type = #tpu.core_type<tc>, window_params = [{transform_indices = @transform_0, window_bounds = array<i64: 1, 48, 128>}, {pipeline_mode = #tpu.pipeline_mode<synchronous>, transform_indices = @transform_1, window_bounds = array<i64: 8, 48>}, {pipeline_mode = #tpu.pipeline_mode<synchronous>, transform_indices = @transform_2, window_bounds = array<i64: 8, 1>}, {transform_indices = @transform_3, window_bounds = array<i64: 1, 8, 128>}]} {
    %c0 = arith.constant 0 : index
    %c0_0 = arith.constant 0 : index
    %0 = vector.load %arg3[%c0, %c0_0] : memref<8x48xbf16, #tpu.memory_space<vmem>>, vector<8x48xbf16>
    %c0_1 = arith.constant 0 : index
    %c0_2 = arith.constant 0 : index
    %c0_3 = arith.constant 0 : index
    %1 = vector.load %arg2[%c0_1, %c0_2, %c0_3] : memref<1x48x128xbf16, #tpu.memory_space<vmem>>, vector<1x48x128xbf16>
    %2 = vector.shape_cast %1 : vector<1x48x128xbf16> to vector<48x128xbf16>
    %cst = arith.constant dense<0.000000e+00> : vector<8x128xf32>
    %3 = tpu.matmul %0, %2, %cst {dimension_numbers = #tpu.dot_dimension_numbers<[1], [0], [0], [1], [0, 0, 1, 1], [], []>} : vector<8x48xbf16>, vector<48x128xbf16>, vector<8x128xf32> -> vector<8x128xf32>
    %c0_4 = arith.constant 0 : index
    %c0_5 = arith.constant 0 : index
    %4 = vector.load %arg4[%c0_4, %c0_5] : memref<8x1xf32, #tpu.memory_space<vmem>>, vector<8x1xf32>
    %5 = vector.broadcast %4 : vector<8x1xf32> to vector<8x128xf32>
    %6 = arith.addf %3, %5 : vector<8x128xf32>
    %cst_6 = arith.constant 0.000000e+00 : f32
    %7 = vector.broadcast %cst_6 : f32 to vector<8x128xf32>
    %8 = arith.maximumf %6, %7 : vector<8x128xf32>
    %9 = arith.truncf %8 : vector<8x128xf32> to vector<8x128xbf16>
    %c0_7 = arith.constant 0 : index
    %c0_8 = arith.constant 0 : index
    %c0_9 = arith.constant 0 : index
    %10 = vector.load %arg5[%c0_7, %c0_8, %c0_9] : memref<1x8x128xbf16, #tpu.memory_space<vmem>>, vector<1x8x128xbf16>
    %11 = vector.shape_cast %10 : vector<1x8x128xbf16> to vector<8x128xbf16>
    %12 = vector.shape_cast %9 : vector<8x128xbf16> to vector<1x8x128xbf16>
    tpu.vector_store %arg5[%c0_7, %c0_8, %c0_9], %12 {strides = array<i32>} : memref<1x8x128xbf16, #tpu.memory_space<vmem>>, vector<1x8x128xbf16>,
    return
  }
  func.func @transform_0(%arg0: i32, %arg1: i32) -> (i32, i32, i32) {
    %c0_i32 = arith.constant 0 : i32
    %c0_i32_0 = arith.constant 0 : i32
    return %arg0, %c0_i32, %arg1 : i32, i32, i32
  }
  func.func @transform_1(%arg0: i32, %arg1: i32) -> (i32, i32) {
    %c0_i32 = arith.constant 0 : i32
    %c0_i32_0 = arith.constant 0 : i32
    %c0_i32_1 = arith.constant 0 : i32
    return %c0_i32, %c0_i32_0 : i32, i32
  }
  func.func @transform_2(%arg0: i32, %arg1: i32) -> (i32, i32) {
    %c0_i32 = arith.constant 0 : i32
    %c0_i32_0 = arith.constant 0 : i32
    %c0_i32_1 = arith.constant 0 : i32
    return %c0_i32, %c0_i32_0 : i32, i32
  }
  func.func @transform_3(%arg0: i32, %arg1: i32) -> (i32, i32, i32) {
    %c0_i32 = arith.constant 0 : i32
    %c0_i32_0 = arith.constant 0 : i32
    return %arg0, %c0_i32, %arg1 : i32, i32, i32
  }
}

module attributes {stable_mosaic.version = 11 : i64} {
  func.func @_costvol_kernel(%arg0: i32, %arg1: i32, %arg2: i32, %arg3: memref<4xf32, #tpu.memory_space<smem>>, %arg4: memref<1x8x128xbf16, #tpu.memory_space<vmem>>, %arg5: memref<1x2x8x8x128xbf16, #tpu.memory_space<vmem>>, %arg6: memref<1x8x128xf32, #tpu.memory_space<vmem>>) attributes {dimension_semantics = [#tpu.dimension_semantics<parallel>, #tpu.dimension_semantics<parallel>, #tpu.dimension_semantics<parallel>], iteration_bounds = array<i64: 2, 1, 1>, scalar_prefetch = 0 : i64, scratch_operands = 0 : i64, tpu.core_type = #tpu.core_type<tc>, window_params = [{transform_indices = @transform_0, window_bounds = array<i64: 4>}, {transform_indices = @transform_1, window_bounds = array<i64: 1, 8, 128>}, {transform_indices = @transform_2, window_bounds = array<i64: 1, 2, 8, 8, 128>}, {transform_indices = @transform_3, window_bounds = array<i64: 1, 8, 128>}]} {
    %c0 = arith.constant 0 : index
    %c0_0 = arith.constant 0 : index
    %c0_1 = arith.constant 0 : index
    %0 = vector.load %arg4[%c0, %c0_0, %c0_1] : memref<1x8x128xbf16, #tpu.memory_space<vmem>>, vector<1x8x128xbf16>
    %1 = vector.shape_cast %0 : vector<1x8x128xbf16> to vector<8x128xbf16>
    %cst = arith.constant 0.000000e+00 : f32
    %2 = vector.broadcast %cst : f32 to vector<8x128xf32>
    %c0_i32 = arith.constant 0 : i32
    %c2_i32 = arith.constant 2 : i32
    %3 = arith.muli %arg0, %c2_i32 : i32
    %4 = arith.addi %3, %c0_i32 : i32
    %5 = arith.index_cast %4 : i32 to index
    %6 = memref.load %arg3[%5] : memref<4xf32, #tpu.memory_space<smem>>
    %c0_2 = arith.constant 0 : index
    %7 = arith.index_cast %c0_i32 : i32 to index
    %c0_3 = arith.constant 0 : index
    %c0_4 = arith.constant 0 : index
    %c0_5 = arith.constant 0 : index
    %8 = vector.load %arg5[%c0_2, %7, %c0_3, %c0_4, %c0_5] : memref<1x2x8x8x128xbf16, #tpu.memory_space<vmem>>, vector<1x1x1x8x128xbf16>
    %9 = vector.shape_cast %8 : vector<1x1x1x8x128xbf16> to vector<8x128xbf16>
    %10 = arith.mulf %1, %9 : vector<8x128xbf16>
    %11 = arith.extf %10 : vector<8x128xbf16> to vector<8x128xf32>
    %cst_6 = arith.constant dense<0.000000e+00> : vector<128xf32>
    %12 = vector.multi_reduction <add>, %11, %cst_6 [0] : vector<8x128xf32> to vector<128xf32>
    %13 = vector.shape_cast %12 : vector<128xf32> to vector<1x128xf32>
    %c0_7 = arith.constant 0 : index
    %14 = arith.index_cast %c0_i32 : i32 to index
    %c1 = arith.constant 1 : index
    %c0_8 = arith.constant 0 : index
    %c0_9 = arith.constant 0 : index
    %15 = vector.load %arg5[%c0_7, %14, %c1, %c0_8, %c0_9] : memref<1x2x8x8x128xbf16, #tpu.memory_space<vmem>>, vector<1x1x1x8x128xbf16>
    %16 = vector.shape_cast %15 : vector<1x1x1x8x128xbf16> to vector<8x128xbf16>
    %17 = arith.mulf %1, %16 : vector<8x128xbf16>
    %18 = arith.extf %17 : vector<8x128xbf16> to vector<8x128xf32>
    %cst_10 = arith.constant dense<0.000000e+00> : vector<128xf32>
    %19 = vector.multi_reduction <add>, %18, %cst_10 [0] : vector<8x128xf32> to vector<128xf32>
    %20 = vector.shape_cast %19 : vector<128xf32> to vector<1x128xf32>
    %c0_11 = arith.constant 0 : index
    %21 = arith.index_cast %c0_i32 : i32 to index
    %c2 = arith.constant 2 : index
    %c0_12 = arith.constant 0 : index
    %c0_13 = arith.constant 0 : index
    %22 = vector.load %arg5[%c0_11, %21, %c2, %c0_12, %c0_13] : memref<1x2x8x8x128xbf16, #tpu.memory_space<vmem>>, vector<1x1x1x8x128xbf16>
    %23 = vector.shape_cast %22 : vector<1x1x1x8x128xbf16> to vector<8x128xbf16>
    %24 = arith.mulf %1, %23 : vector<8x128xbf16>
    %25 = arith.extf %24 : vector<8x128xbf16> to vector<8x128xf32>
    %cst_14 = arith.constant dense<0.000000e+00> : vector<128xf32>
    %26 = vector.multi_reduction <add>, %25, %cst_14 [0] : vector<8x128xf32> to vector<128xf32>
    %27 = vector.shape_cast %26 : vector<128xf32> to vector<1x128xf32>
    %c0_15 = arith.constant 0 : index
    %28 = arith.index_cast %c0_i32 : i32 to index
    %c3 = arith.constant 3 : index
    %c0_16 = arith.constant 0 : index
    %c0_17 = arith.constant 0 : index
    %29 = vector.load %arg5[%c0_15, %28, %c3, %c0_16, %c0_17] : memref<1x2x8x8x128xbf16, #tpu.memory_space<vmem>>, vector<1x1x1x8x128xbf16>
    %30 = vector.shape_cast %29 : vector<1x1x1x8x128xbf16> to vector<8x128xbf16>
    %31 = arith.mulf %1, %30 : vector<8x128xbf16>
    %32 = arith.extf %31 : vector<8x128xbf16> to vector<8x128xf32>
    %cst_18 = arith.constant dense<0.000000e+00> : vector<128xf32>
    %33 = vector.multi_reduction <add>, %32, %cst_18 [0] : vector<8x128xf32> to vector<128xf32>
    %34 = vector.shape_cast %33 : vector<128xf32> to vector<1x128xf32>
    %c0_19 = arith.constant 0 : index
    %35 = arith.index_cast %c0_i32 : i32 to index
    %c4 = arith.constant 4 : index
    %c0_20 = arith.constant 0 : index
    %c0_21 = arith.constant 0 : index
    %36 = vector.load %arg5[%c0_19, %35, %c4, %c0_20, %c0_21] : memref<1x2x8x8x128xbf16, #tpu.memory_space<vmem>>, vector<1x1x1x8x128xbf16>
    %37 = vector.shape_cast %36 : vector<1x1x1x8x128xbf16> to vector<8x128xbf16>
    %38 = arith.mulf %1, %37 : vector<8x128xbf16>
    %39 = arith.extf %38 : vector<8x128xbf16> to vector<8x128xf32>
    %cst_22 = arith.constant dense<0.000000e+00> : vector<128xf32>
    %40 = vector.multi_reduction <add>, %39, %cst_22 [0] : vector<8x128xf32> to vector<128xf32>
    %41 = vector.shape_cast %40 : vector<128xf32> to vector<1x128xf32>
    %c0_23 = arith.constant 0 : index
    %42 = arith.index_cast %c0_i32 : i32 to index
    %c5 = arith.constant 5 : index
    %c0_24 = arith.constant 0 : index
    %c0_25 = arith.constant 0 : index
    %43 = vector.load %arg5[%c0_23, %42, %c5, %c0_24, %c0_25] : memref<1x2x8x8x128xbf16, #tpu.memory_space<vmem>>, vector<1x1x1x8x128xbf16>
    %44 = vector.shape_cast %43 : vector<1x1x1x8x128xbf16> to vector<8x128xbf16>
    %45 = arith.mulf %1, %44 : vector<8x128xbf16>
    %46 = arith.extf %45 : vector<8x128xbf16> to vector<8x128xf32>
    %cst_26 = arith.constant dense<0.000000e+00> : vector<128xf32>
    %47 = vector.multi_reduction <add>, %46, %cst_26 [0] : vector<8x128xf32> to vector<128xf32>
    %48 = vector.shape_cast %47 : vector<128xf32> to vector<1x128xf32>
    %c0_27 = arith.constant 0 : index
    %49 = arith.index_cast %c0_i32 : i32 to index
    %c6 = arith.constant 6 : index
    %c0_28 = arith.constant 0 : index
    %c0_29 = arith.constant 0 : index
    %50 = vector.load %arg5[%c0_27, %49, %c6, %c0_28, %c0_29] : memref<1x2x8x8x128xbf16, #tpu.memory_space<vmem>>, vector<1x1x1x8x128xbf16>
    %51 = vector.shape_cast %50 : vector<1x1x1x8x128xbf16> to vector<8x128xbf16>
    %52 = arith.mulf %1, %51 : vector<8x128xbf16>
    %53 = arith.extf %52 : vector<8x128xbf16> to vector<8x128xf32>
    %cst_30 = arith.constant dense<0.000000e+00> : vector<128xf32>
    %54 = vector.multi_reduction <add>, %53, %cst_30 [0] : vector<8x128xf32> to vector<128xf32>
    %55 = vector.shape_cast %54 : vector<128xf32> to vector<1x128xf32>
    %c0_31 = arith.constant 0 : index
    %56 = arith.index_cast %c0_i32 : i32 to index
    %c7 = arith.constant 7 : index
    %c0_32 = arith.constant 0 : index
    %c0_33 = arith.constant 0 : index
    %57 = vector.load %arg5[%c0_31, %56, %c7, %c0_32, %c0_33] : memref<1x2x8x8x128xbf16, #tpu.memory_space<vmem>>, vector<1x1x1x8x128xbf16>
    %58 = vector.shape_cast %57 : vector<1x1x1x8x128xbf16> to vector<8x128xbf16>
    %59 = arith.mulf %1, %58 : vector<8x128xbf16>
    %60 = arith.extf %59 : vector<8x128xbf16> to vector<8x128xf32>
    %cst_34 = arith.constant dense<0.000000e+00> : vector<128xf32>
    %61 = vector.multi_reduction <add>, %60, %cst_34 [0] : vector<8x128xf32> to vector<128xf32>
    %62 = vector.shape_cast %61 : vector<128xf32> to vector<1x128xf32>
    %63 = tpu.concatenate %13, %20, %27, %34, %41, %48, %55, %62 in 0 : vector<1x128xf32>, vector<1x128xf32>, vector<1x128xf32>, vector<1x128xf32>, vector<1x128xf32>, vector<1x128xf32>, vector<1x128xf32>, vector<1x128xf32> -> vector<8x128xf32>
    %64 = vector.broadcast %6 : f32 to vector<8x128xf32>
    %65 = arith.mulf %64, %63 : vector<8x128xf32>
    %66 = arith.addf %2, %65 : vector<8x128xf32>
    %c1_i32 = arith.constant 1 : i32
    %c2_i32_35 = arith.constant 2 : i32
    %67 = arith.muli %arg0, %c2_i32_35 : i32
    %68 = arith.addi %67, %c1_i32 : i32
    %69 = arith.index_cast %68 : i32 to index
    %70 = memref.load %arg3[%69] : memref<4xf32, #tpu.memory_space<smem>>
    %c0_36 = arith.constant 0 : index
    %71 = arith.index_cast %c1_i32 : i32 to index
    %c0_37 = arith.constant 0 : index
    %c0_38 = arith.constant 0 : index
    %c0_39 = arith.constant 0 : index
    %72 = vector.load %arg5[%c0_36, %71, %c0_37, %c0_38, %c0_39] : memref<1x2x8x8x128xbf16, #tpu.memory_space<vmem>>, vector<1x1x1x8x128xbf16>
    %73 = vector.shape_cast %72 : vector<1x1x1x8x128xbf16> to vector<8x128xbf16>
    %74 = arith.mulf %1, %73 : vector<8x128xbf16>
    %75 = arith.extf %74 : vector<8x128xbf16> to vector<8x128xf32>
    %cst_40 = arith.constant dense<0.000000e+00> : vector<128xf32>
    %76 = vector.multi_reduction <add>, %75, %cst_40 [0] : vector<8x128xf32> to vector<128xf32>
    %77 = vector.shape_cast %76 : vector<128xf32> to vector<1x128xf32>
    %c0_41 = arith.constant 0 : index
    %78 = arith.index_cast %c1_i32 : i32 to index
    %c1_42 = arith.constant 1 : index
    %c0_43 = arith.constant 0 : index
    %c0_44 = arith.constant 0 : index
    %79 = vector.load %arg5[%c0_41, %78, %c1_42, %c0_43, %c0_44] : memref<1x2x8x8x128xbf16, #tpu.memory_space<vmem>>, vector<1x1x1x8x128xbf16>
    %80 = vector.shape_cast %79 : vector<1x1x1x8x128xbf16> to vector<8x128xbf16>
    %81 = arith.mulf %1, %80 : vector<8x128xbf16>
    %82 = arith.extf %81 : vector<8x128xbf16> to vector<8x128xf32>
    %cst_45 = arith.constant dense<0.000000e+00> : vector<128xf32>
    %83 = vector.multi_reduction <add>, %82, %cst_45 [0] : vector<8x128xf32> to vector<128xf32>
    %84 = vector.shape_cast %83 : vector<128xf32> to vector<1x128xf32>
    %c0_46 = arith.constant 0 : index
    %85 = arith.index_cast %c1_i32 : i32 to index
    %c2_47 = arith.constant 2 : index
    %c0_48 = arith.constant 0 : index
    %c0_49 = arith.constant 0 : index
    %86 = vector.load %arg5[%c0_46, %85, %c2_47, %c0_48, %c0_49] : memref<1x2x8x8x128xbf16, #tpu.memory_space<vmem>>, vector<1x1x1x8x128xbf16>
    %87 = vector.shape_cast %86 : vector<1x1x1x8x128xbf16> to vector<8x128xbf16>
    %88 = arith.mulf %1, %87 : vector<8x128xbf16>
    %89 = arith.extf %88 : vector<8x128xbf16> to vector<8x128xf32>
    %cst_50 = arith.constant dense<0.000000e+00> : vector<128xf32>
    %90 = vector.multi_reduction <add>, %89, %cst_50 [0] : vector<8x128xf32> to vector<128xf32>
    %91 = vector.shape_cast %90 : vector<128xf32> to vector<1x128xf32>
    %c0_51 = arith.constant 0 : index
    %92 = arith.index_cast %c1_i32 : i32 to index
    %c3_52 = arith.constant 3 : index
    %c0_53 = arith.constant 0 : index
    %c0_54 = arith.constant 0 : index
    %93 = vector.load %arg5[%c0_51, %92, %c3_52, %c0_53, %c0_54] : memref<1x2x8x8x128xbf16, #tpu.memory_space<vmem>>, vector<1x1x1x8x128xbf16>
    %94 = vector.shape_cast %93 : vector<1x1x1x8x128xbf16> to vector<8x128xbf16>
    %95 = arith.mulf %1, %94 : vector<8x128xbf16>
    %96 = arith.extf %95 : vector<8x128xbf16> to vector<8x128xf32>
    %cst_55 = arith.constant dense<0.000000e+00> : vector<128xf32>
    %97 = vector.multi_reduction <add>, %96, %cst_55 [0] : vector<8x128xf32> to vector<128xf32>
    %98 = vector.shape_cast %97 : vector<128xf32> to vector<1x128xf32>
    %c0_56 = arith.constant 0 : index
    %99 = arith.index_cast %c1_i32 : i32 to index
    %c4_57 = arith.constant 4 : index
    %c0_58 = arith.constant 0 : index
    %c0_59 = arith.constant 0 : index
    %100 = vector.load %arg5[%c0_56, %99, %c4_57, %c0_58, %c0_59] : memref<1x2x8x8x128xbf16, #tpu.memory_space<vmem>>, vector<1x1x1x8x128xbf16>
    %101 = vector.shape_cast %100 : vector<1x1x1x8x128xbf16> to vector<8x128xbf16>
    %102 = arith.mulf %1, %101 : vector<8x128xbf16>
    %103 = arith.extf %102 : vector<8x128xbf16> to vector<8x128xf32>
    %cst_60 = arith.constant dense<0.000000e+00> : vector<128xf32>
    %104 = vector.multi_reduction <add>, %103, %cst_60 [0] : vector<8x128xf32> to vector<128xf32>
    %105 = vector.shape_cast %104 : vector<128xf32> to vector<1x128xf32>
    %c0_61 = arith.constant 0 : index
    %106 = arith.index_cast %c1_i32 : i32 to index
    %c5_62 = arith.constant 5 : index
    %c0_63 = arith.constant 0 : index
    %c0_64 = arith.constant 0 : index
    %107 = vector.load %arg5[%c0_61, %106, %c5_62, %c0_63, %c0_64] : memref<1x2x8x8x128xbf16, #tpu.memory_space<vmem>>, vector<1x1x1x8x128xbf16>
    %108 = vector.shape_cast %107 : vector<1x1x1x8x128xbf16> to vector<8x128xbf16>
    %109 = arith.mulf %1, %108 : vector<8x128xbf16>
    %110 = arith.extf %109 : vector<8x128xbf16> to vector<8x128xf32>
    %cst_65 = arith.constant dense<0.000000e+00> : vector<128xf32>
    %111 = vector.multi_reduction <add>, %110, %cst_65 [0] : vector<8x128xf32> to vector<128xf32>
    %112 = vector.shape_cast %111 : vector<128xf32> to vector<1x128xf32>
    %c0_66 = arith.constant 0 : index
    %113 = arith.index_cast %c1_i32 : i32 to index
    %c6_67 = arith.constant 6 : index
    %c0_68 = arith.constant 0 : index
    %c0_69 = arith.constant 0 : index
    %114 = vector.load %arg5[%c0_66, %113, %c6_67, %c0_68, %c0_69] : memref<1x2x8x8x128xbf16, #tpu.memory_space<vmem>>, vector<1x1x1x8x128xbf16>
    %115 = vector.shape_cast %114 : vector<1x1x1x8x128xbf16> to vector<8x128xbf16>
    %116 = arith.mulf %1, %115 : vector<8x128xbf16>
    %117 = arith.extf %116 : vector<8x128xbf16> to vector<8x128xf32>
    %cst_70 = arith.constant dense<0.000000e+00> : vector<128xf32>
    %118 = vector.multi_reduction <add>, %117, %cst_70 [0] : vector<8x128xf32> to vector<128xf32>
    %119 = vector.shape_cast %118 : vector<128xf32> to vector<1x128xf32>
    %c0_71 = arith.constant 0 : index
    %120 = arith.index_cast %c1_i32 : i32 to index
    %c7_72 = arith.constant 7 : index
    %c0_73 = arith.constant 0 : index
    %c0_74 = arith.constant 0 : index
    %121 = vector.load %arg5[%c0_71, %120, %c7_72, %c0_73, %c0_74] : memref<1x2x8x8x128xbf16, #tpu.memory_space<vmem>>, vector<1x1x1x8x128xbf16>
    %122 = vector.shape_cast %121 : vector<1x1x1x8x128xbf16> to vector<8x128xbf16>
    %123 = arith.mulf %1, %122 : vector<8x128xbf16>
    %124 = arith.extf %123 : vector<8x128xbf16> to vector<8x128xf32>
    %cst_75 = arith.constant dense<0.000000e+00> : vector<128xf32>
    %125 = vector.multi_reduction <add>, %124, %cst_75 [0] : vector<8x128xf32> to vector<128xf32>
    %126 = vector.shape_cast %125 : vector<128xf32> to vector<1x128xf32>
    %127 = tpu.concatenate %77, %84, %91, %98, %105, %112, %119, %126 in 0 : vector<1x128xf32>, vector<1x128xf32>, vector<1x128xf32>, vector<1x128xf32>, vector<1x128xf32>, vector<1x128xf32>, vector<1x128xf32>, vector<1x128xf32> -> vector<8x128xf32>
    %128 = vector.broadcast %70 : f32 to vector<8x128xf32>
    %129 = arith.mulf %128, %127 : vector<8x128xf32>
    %130 = arith.addf %66, %129 : vector<8x128xf32>
    %c2_i32_76 = arith.constant 2 : i32
    %c0_77 = arith.constant 0 : index
    %c0_78 = arith.constant 0 : index
    %c0_79 = arith.constant 0 : index
    %131 = vector.load %arg6[%c0_77, %c0_78, %c0_79] : memref<1x8x128xf32, #tpu.memory_space<vmem>>, vector<1x8x128xf32>
    %132 = vector.shape_cast %131 : vector<1x8x128xf32> to vector<8x128xf32>
    %133 = vector.shape_cast %130 : vector<8x128xf32> to vector<1x8x128xf32>
    tpu.vector_store %arg6[%c0_77, %c0_78, %c0_79], %133 {strides = array<i32>} : memref<1x8x128xf32, #tpu.memory_space<vmem>>, vector<1x8x128xf32>,
    return
  }
  func.func @transform_0(%arg0: i32, %arg1: i32, %arg2: i32) -> i32 {
    %c0_i32 = arith.constant 0 : i32
    %c0_i32_0 = arith.constant 0 : i32
    return %c0_i32 : i32
  }
  func.func @transform_1(%arg0: i32, %arg1: i32, %arg2: i32) -> (i32, i32, i32) {
    %c0_i32 = arith.constant 0 : i32
    %c0_i32_0 = arith.constant 0 : i32
    return %arg0, %c0_i32, %arg1 : i32, i32, i32
  }
  func.func @transform_2(%arg0: i32, %arg1: i32, %arg2: i32) -> (i32, i32, i32, i32, i32) {
    %c0_i32 = arith.constant 0 : i32
    %c0_i32_0 = arith.constant 0 : i32
    %c0_i32_1 = arith.constant 0 : i32
    return %arg0, %c0_i32, %arg2, %c0_i32_0, %arg1 : i32, i32, i32, i32, i32
  }
  func.func @transform_3(%arg0: i32, %arg1: i32, %arg2: i32) -> (i32, i32, i32) {
    %c0_i32 = arith.constant 0 : i32
    return %arg0, %arg2, %arg1 : i32, i32, i32
  }
}

</mosaic_0001>

<bundles_post_ra>
// kernel: custom-call.11
= control target key start
LH: loop header
LB: loop body
LE: loop exit
PB: predicated region body
PF: predicated region fallthrough
CT: control target
= control target key end

     0   :  { %5 = vsyncpa [#allocation6], 0  ;;  %s911_s0 = inlined_call_operand.vmem [shape: f32[2,3,3], index: 0, kind: input, shape index: {}]   ;;  %s912_s1 = inlined_call_operand.vmem [shape: f32[2,3,3], index: 1, kind: output, shape index: {0}]   ;;  %s913_s2 = inlined_call_operand.hbm [shape: s32[2,3], index: 2, kind: output, shape index: {1}]   ;;  %s914_s3 = inlined_call_operand.vmem [shape: s32[2,3], index: 3, kind: output, shape index: {2}]  }
   0x1   :  { %7 = vsyncpa [#allocation6 + $0x1], 0  ;;  %s735_s12 = smov 0   ;;  %s737_s13 = smov 0  }
   0x2   :  { %s739_s14 = smov 0   ;;  %s741_s15 = smov 0  }
   0x3 LB: > { %s756_s16 = sadd.s32 4294967295, %s708_s15   ;;  %s571_s17 = sadd.s32 4294967294, %s708_s15   ;;  %s708_s15 = sphi %s741_s15, %s920_s15   ;;  %s704_s14 = sphi %s739_s14, %s919_s14   ;;  %s700_s13 = sphi %s737_s13, %s918_s13   ;;  %s696_s12 = sphi %s735_s12, %s917_s12  }
   0x4   : > { %s760_s18 = sadd.s32 1, %s708_s15   ;;  %s17_s19 = sshrl.u32 %s708_s15, 3 }
   0x5   : > { %s18_s20 = sshrl.u32 %s760_s18, 3  ;;  %s22_s21 = sadd.s32 1, %s704_s14 }
   0x6   : > { %s19_s22 = ssub.s32 %s17_s19, %s18_s20  ;;  %p32_p0 = scmp.ne.s32.totalorder %s704_s14, %s700_s13 }
   0x7   : > { %p20_p1 = scmp.eq.s32.totalorder %s19_s22, 0  ;;  %p33_p2 = scmp.eq.s32.totalorder %s756_s16, 1 }
   0x8   : > { %p38_p3 = scmp.ne.s32.totalorder %s700_s13, %s696_s12  ;;  %p39_p4 = scmp.eq.s32.totalorder %s571_s17, 1 }
   0x9   : > { %s771_s23 = scalar_select %p20_p1, %s704_s14, %s22_s21  }
   0xa   : > { %p773_p5 = por %p33_p2, %p32_p0  ;;  %p777_p6 = por %p39_p4, %p38_p3 }
   0xb   : > { %p573_p7 = scmp.ge.s32.totalorder %s708_s15, 2 }
   0xc   : > { %s85_s26 = sand.u32 (!%p573_p7), 1, %s708_s15   ;;  %s575_s27 = sshll.u32 (!%p573_p7), %s708_s15, 2 }
   0xd   : > { %83 = sbr.rel (%p573_p7) target bundleno = 20 (0x14), region = 16  ;;  %s574_s28 = sshll.u32 (!%p573_p7), %s85_s26, 2 }
   0xe   : > { %s89_s4 = scalar_lea.vmem (!%p573_p7), %s911_s0, %s575_s27  ;;  %s87_s5 = scalar_lea.vmem (!%p573_p7), [#allocation1], %s574_s28 }
  0x12   : > { %v106_v0 = vld [vmem:[%s89_s4] sm:$0xf] }
  0x13   : > { %107 = vst [vmem:[%s87_s5] sm:$0xf] %v106_v0 }
  0x14 PF: > { %p576_p8 = scmp.ge.s32.totalorder %s708_s15, 1  ;;  %p124_p9 = scmp.lt.s32.totalorder %s708_s15, 3 }
  0x16   : > { %p125_p10 = pnand %p576_p8, %p124_p9 }
  0x18   : > { %128 = sbr.rel (%p125_p10) target bundleno = 484 (0x1e4), region = 50 }
  0x1d   : > { %s135_s6 = sand.u32 1, %s756_s16   ;;  %s146_s7 = sand.u32 1, %s700_s13   ;;  %v168_v1 = vlaneseq  ;;  %v714_v4 = vmov 0  }
  0x1e   : > { %s793_s8 = sshll.u32 %s135_s6, 2  ;;  %s797_s9 = sshll.u32 %s146_s7, 1 }
  0x1f   : > { %v800_v2 = vshrl.u32 %v168_v1, 7  ;;  %s137_s10 = scalar_lea.vmem [#allocation1], %s793_s8  ;;  %s163_s11 = sand.u32 7, %s756_s16  }
  0x20   : > { %v157_v3 = vld [vmem:[%s137_s10] sm:$0xf]  ;;  %s805_s17 = scalar_lea.vmem [#allocation4], %s163_s11  ;;  %s141_s19 = scalar_lea.vmem [#allocation3], %s793_s8 }
  0x21   : > { %158 = vst [vmem:[#allocation0] sm:$0xf] %v157_v3  ;;  %s148_s20 = scalar_lea.vmem [#allocation5], %s797_s9  ;;  %s154_s21 = scalar_lea.vmem [#allocation8], %s797_s9 }
  0x22   : > { %172 = vst [vmem:[#allocation9] sm:$0xff] %v800_v2  ;;  %s811_s22 = scalar_lea.vmem [#allocation7], %s163_s11  ;;  %s813_s26 = smov 0  }
  0x23   : > { %167 = vst [vmem:[%s805_s17] sm:$0x1] %v714_v4 }
  0x28   : > { %v161_v5 = vld [vmem:[#allocation0] sm:$0xff] }
  0x29   : > { %162 = vst [vmem:[#allocation2] sm:$0xff] %v161_v5 }
  0x2a LB: >> { %vm188_vm0 = vcmp.lt.s32.totalorder %v800_v2, 3  ;;  %v820_v8 = vstv %s712_s26  ;;  %s229_s27 = ssub.s32 128, %s712_s26  ;;  %v235_v39 = vand.u32 127, %v168_v1  ;;  %s241_s28 = scalar_lea.vmem [#allocation2], %s712_s26  ;;  %v238_v42 = vld [vmem:[%s805_s17] ss:$0 sm:$0xff]  ;;  %s712_s26 = sphi %s813_s26, %s178_s26  }
  0x2b   : >> { %vm187_vm1 = vcmp.ge.s32.totalorder %v800_v2, %v820_v8  ;;  %s247_s4 = scalar_lea.vmem [#allocation9], %s712_s26  ;;  %vm267_vm14 = vcmp.gt.s32.totalorder %v800_v2, %v820_v8  ;;  %s178_s26 = sadd.s32 1, %s712_s26  }
  0x2c   : >> { %vm189_vm3 = vmand %vm187_vm1, %vm188_vm0  ;;  %vm236_vm12 = vcmp.eq.s32.totalorder %v235_v39, %v820_v8  ;;  %v249_v44 = vld [vmem:[%s247_s4] ss:$0 sm:$0xff]  ;;  %p175_p11 = scmp.ge.s32.totalorder %s178_s26, 3  }
  0x2d   : > { %s409_s6 = sshrl.u32 (%p175_p11), %s756_s16, 3  ;;  %s415_s26 = sshll.u32 (%p175_p11), %s148_s20, 4  ;;  %s416_s26 = int_to_ptr.vmem [resolvable:$true] %s415_s26 }
  0x2e   : > { %s852_s10 = sshll.u32 (%p175_p11), %s409_s6, 1  ;;  %s363_s6 = scalar_lea.sflag (%p175_p11), [#allocation6], %s146_s7 }
  0x30   : >> { %v183_v6 = vld [vmem:[#allocation2] sm:$0xff]  ;;  %v243_v40 = vld [vmem:[%s241_s28] ss:$0 sm:$0xff] }
  0x31   : >> { %v184_v7 = vand.u32 2147483647, %v183_v6 }
  0x33   : >> { %vm581_vm2 = vcmp.gt.f32.partialorder %v184_v7, -inf }
  0x34   : >> { %vm191_vm4 = vmand %vm189_vm3, %vm581_vm2 }
  0x35   : >> { %v192_v9 = vsel %vm191_vm4, %v800_v2, %v820_v8  ;;  %v193_v10 = vsel %vm191_vm4, %v184_v7, -inf  ;;  %vm284_vm4 = vmand %vm267_vm14, %vm236_vm12 }
  0x36   : >> { %v194_v11 = vrot.slane %v193_v10, 1  ;;  %v195_v12 = vrot.slane %v192_v9, 1 }
  0x38   : >> { %vm196_vm5 = vcmp.ge.f32.partialorder %v194_v11, %v193_v10  ;;  %v199_v13 = vrot.slane %v194_v11, 1  ;;  %v200_v14 = vrot.slane %v195_v12, 1 }
  0x39   : >> { %v197_v15 = vsel %vm196_vm5, %v194_v11, %v193_v10  ;;  %v198_v16 = vsel %vm196_vm5, %v195_v12, %v192_v9  ;;  %vm259_vm5 = vcmp.gt.s32.totalorder %v235_v39, %v820_v8 }
  0x3a   : >> { %vm201_vm6 = vcmp.ge.f32.partialorder %v199_v13, %v197_v15  ;;  %v204_v17 = vrot.slane %v199_v13, 1  ;;  %v205_v18 = vrot.slane %v200_v14, 1 }
  0x3b   : >> { %v202_v19 = vsel %vm201_vm6, %v199_v13, %v197_v15  ;;  %v203_v20 = vsel %vm201_vm6, %v200_v14, %v198_v16 }
  0x3c   : >> { %vm206_vm7 = vcmp.ge.f32.partialorder %v204_v17, %v202_v19  ;;  %v209_v21 = vrot.slane %v204_v17, 1  ;;  %v210_v22 = vrot.slane %v205_v18, 1 }
  0x3d   : >> { %v207_v23 = vsel %vm206_vm7, %v204_v17, %v202_v19  ;;  %v208_v24 = vsel %vm206_vm7, %v205_v18, %v203_v20 }
  0x3e   : >> { %vm211_vm8 = vcmp.ge.f32.partialorder %v209_v21, %v207_v23  ;;  %v214_v25 = vrot.slane %v209_v21, 1  ;;  %v215_v26 = vrot.slane %v210_v22, 1 }
  0x3f   : >> { %v212_v27 = vsel %vm211_vm8, %v209_v21, %v207_v23  ;;  %v213_v28 = vsel %vm211_vm8, %v210_v22, %v208_v24 }
  0x40   : >> { %vm216_vm9 = vcmp.ge.f32.partialorder %v214_v25, %v212_v27  ;;  %v219_v29 = vrot.slane %v214_v25, 1  ;;  %v220_v30 = vrot.slane %v215_v26, 1 }
  0x41   : >> { %v217_v31 = vsel %vm216_vm9, %v214_v25, %v212_v27  ;;  %v218_v32 = vsel %vm216_vm9, %v215_v26, %v213_v28 }
  0x42   : >> { %vm221_vm10 = vcmp.ge.f32.partialorder %v219_v29, %v217_v31  ;;  %v224_v33 = vrot.slane %v219_v29, 1  ;;  %v225_v34 = vrot.slane %v220_v30, 1 }
  0x43   : >> { %v222_v35 = vsel %vm221_vm10, %v219_v29, %v217_v31  ;;  %v223_v36 = vsel %vm221_vm10, %v220_v30, %v218_v32 }
  0x44   : >> { %vm226_vm11 = vcmp.ge.f32.partialorder %v224_v33, %v222_v35 }
  0x45   : >> { %v228_v37 = vsel %vm226_vm11, %v225_v34, %v223_v36 }
  0x46   : >> { %230 = vrot.lane.b32.xlu0 %v228_v37, %s229_s27 }
  0xb8   : >> { %v231_v38 = vpop.permute.xlu0 %230 }
  0xb9   : >> { %590 = vpush %v231_v38 }
  0xea   : >> { %s591_s29 = spop %590 }
  0xeb   : >> { %v237_v41 = vstv %s591_s29  ;;  %s242_s30 = scalar_lea.vmem [#allocation2], %s591_s29  ;;  %s248_s5 = scalar_lea.vmem [#allocation9], %s591_s29 }
  0xec   : >> { %v244_v43 = vld [vmem:[%s242_s30] ss:$0 sm:$0xff]  ;;  %v239_v46 = vsel %vm236_vm12, %v237_v41, %v238_v42 }
  0xed   : >> { %v250_v45 = vld [vmem:[%s248_s5] ss:$0 sm:$0xff]  ;;  %245 = vst [vmem:[%s242_s30] sm:$0x1] %v243_v40  ;;  %vm253_vm13 = vcmp.ne.f32.partialorder %v244_v43, 0.0  ;;  %v260_v62 = vsel %vm259_vm5, %v244_v43, 0.0 }
  0xee   : >> { %246 = vst [vmem:[%s241_s28] sm:$0x1] %v244_v43  ;;  %vm254_vm15 = vmand %vm236_vm12, %vm253_vm13  ;;  %s413_s28 = scalar_lea.hbm (%p175_p11), %s913_s2, %s852_s10 }
  0xef   : >> { %251 = vst [vmem:[%s248_s5] sm:$0x1] %v249_v44  ;;  %v255_v47 = vsel %vm254_vm15, %v244_v43, 1.0  ;;  %s417_s29 = sshll.u32 (%p175_p11), %s413_s28, 4  ;;  %s418_s29 = int_to_ptr.hbm [resolvable:$true] %s417_s29 }
  0xf0   : >> { %252 = vst [vmem:[%s247_s4] sm:$0x1] %v250_v45  ;;  %v268_v48 = vsel %vm267_vm14, %v255_v47, 1.0  ;;  %s656_s11 = sshra.s32 (%p175_p11), %s418_s29, 4  ;;  %s657_s11 = int_to_ptr.hbm [resolvable:$true] %s656_s11 }
  0xf1   : >> { %640 = vrcp.f32 %v268_v48  ;;  %240 = vst [vmem:[%s805_s17] sm:$0x1] %v239_v46  ;;  %v280_v52 = vand.u32 2147483648, %v268_v48  ;;  %v278_v54 = vand.u32 2147483647, %v268_v48  ;;  %vm274_vm1 = vweird.f32 %v268_v48  ;;  %s585_s17 = sshll.u32 (%p175_p11), %s756_s16, 2  ;;  %s658_s16 = scalar_lea.hbm (%p175_p11), %s657_s11, 2 }
  0xf2   : > { %s372_s5 = scalar_lea.vmem (%p175_p11), %s912_s1, %s585_s17  ;;  %p659_p12 = scmp.ne.s32.totalorder (%p175_p11), %s657_s11, %s658_s16 }
  0xf3   : >> { %v281_v56 = vor.u32 1.1754944e-38, %v280_v52  ;;  %vm279_vm3 = vcmp.eq.f32.partialorder %v278_v54, 8.507059e+37  ;;  %s662_s17 = scalar_lea.hbm (%p175_p11), %s913_s2, 2  ;;  %p663_p1 = scmp.lt.s32.totalorder (%p175_p11), %s657_s11, %s913_s2 }
  0xf4   : > { %p660_p13 = pnand (%p175_p11), %p659_p12, %p773_p5  ;;  %p664_p2 = scmp.lt.s32.totalorder (%p175_p11), %s662_s17, %s658_s16 }
  0xf5   : >> { %v264_v58 = vld [vmem:[#allocation2] sm:$0xff] }
  0xf6   : > { %p661_p0 = pneg (%p175_p11), %p660_p13  ;;  %p665_p3 = por (%p175_p11), %p664_p2, %p663_p1 }
  0xf7   : >> { %v641_v49 = vpop.eup %640  ;;  %v291_v4 = vld [vmem:[#allocation9] sm:$0xff] (%p175_p11) }
  0xf8   : >> { %v270_v50 = vmul.f32 %v641_v49, %v268_v48  ;;  %vm275_vm0 = vweird.f32 %v641_v49  ;;  %v348_v1 = vld [vmem:[#allocation4] sm:$0x3] (%p175_p11)  ;;  %p666_p4 = pnand (%p175_p11), %p665_p3, %p661_p0 }
  0xf9   : >> { %vm276_vm2 = vmor %vm274_vm1, %vm275_vm0  ;;  %351 = vst [vmem:[%s148_s20] sm:$0x3] (%p175_p11), %v348_v1 }
  0xfa   : >> { %v271_v51 = vsub.f32 1.0, %v270_v50 }
  0xfc   : >> { %v272_v53 = vmul.f32 %v641_v49, %v271_v51 }
  0xfe   : >> { %v273_v55 = vadd.f32 %v641_v49, %v272_v53 }
 0x100   : >> { %v277_v57 = vsel %vm276_vm2, %v641_v49, %v273_v55 }
 0x101   : >> { %v282_v59 = vsel %vm279_vm3, %v281_v56, %v277_v57 }
 0x102   : >> { %v283_v60 = vmul.f32 %v282_v59, %v264_v58 }
 0x104   : >> { %v285_v61 = vsel %vm284_vm4, %v283_v60, 0.0 }
 0x105   : >> { %286 = vadd.xlane.f32.xlu0 %v285_v61 }
 0x12e   : > { %307 = vxpose.xlu0.b32.start.end [1/1] (short) (narrow) (%p175_p11), %v291_v4, 8 }
 0x178   : >> { %v287_v63 = vpop.xlane.xlu0 %286 }
 0x179   : >> { %v288_v0 = vmul.f32 %v287_v63, %v260_v62  ;;  %177 = sbr.rel (!%p175_p11) target bundleno = 42 (0x2a), region = 202 }
 0x17b   : >> { %v289_v3 = vsub.f32 %v283_v60, %v288_v0 }
 0x17d   : >> { %290 = vst [vmem:[#allocation2] sm:$0xff] %v289_v3 }
 0x184   : > { %v342_v5 = vld [vmem:[#allocation2] sm:$0xf] }
 0x185   : > { %345 = vst [vmem:[%s141_s19] sm:$0xf] %v342_v5 }
 0x18c   : > { %v389_v2 = vld [vmem:[%s141_s19] sm:$0xf] }
 0x18d   : > { %390 = vst [vmem:[%s372_s5] sm:$0xf] %v389_v2 }
 0x18e   : > { %669 = shalt.err (!%p666_p4)
}
 0x18f   : > { %592 = dma.vmem_to_hbm [thread:$0]  (%p773_p5), %s416_s26, 32, %s418_s29, %s363_s6  }
 0x190   : > { %s426_s19 = scalar_lea.vmem (%p773_p5), %s914_s3, %s852_s10 }
 0x1d2   : > { %v323_v6 = vpop.trf.xlu0 }
 0x1d3   : > { %339 = vst [vmem:[%s811_s22] sm:$0x1] %v323_v6 }
 0x1d7   : > { %423 = sbr.rel (!%p773_p5) target bundleno = 484 (0x1e4), region = 96 }
 0x1da   : > { %v354_v7 = vld [vmem:[#allocation7] sm:$0x3] }
 0x1db   : > { %357 = vst [vmem:[%s154_s21] sm:$0x3] %v354_v7 }
 0x1e2   : > { %v443_v8 = vld [vmem:[%s154_s21] sm:$0x3] }
 0x1e3   : > { %444 = vst [vmem:[%s426_s19] sm:$0x3] %v443_v8 }
 0x1e4 PF: > { %s472_s20 = sand.u32 1, %s696_s12   ;;  %p595_p8 = pnand %p573_p7, %p777_p6 }
 0x1e5   : > { %s473_s24 = scalar_lea.sflag [#allocation6], %s472_s20 }
 0x1e6   : > { %p596_p9 = pneg %p595_p8 }
 0x1e8   : > { %691 = dma.done.wait (%p596_p9), %s473_s24, 32  }
 0x1e9   : > { %693 = vsyncadd (%p596_p9), %s473_s24, 4294967264  ;;  %p10_p5 = scmp.ge.s32.totalorder %s760_s18, 4   ;;  %s917_s12 = smov %s700_s13 }
 0x1ea   : > { %s918_s13 = smov %s704_s14  ;;  %s919_s14 = smov %s771_s23 }
 0x1eb   : > { %s920_s15 = smov %s760_s18  ;;  %12 = sbr.rel (!%p10_p5) target bundleno = 3 (0x3), region = 213 }
 0x1f0   :  { %486 = vsyncpa [#allocation6], 1 }
 0x1f1   :  { %488 = vsyncpa [#allocation6 + $0x1], 1 }

// kernel: magnet_f_forward.2
= control target key start
LH: loop header
LB: loop body
LE: loop exit
PB: predicated region body
PF: predicated region fallthrough
CT: control target
= control target key end

     0   :  { %s426_s12 = smov 0   ;;  %s428_s13 = smov 0   ;;  %s465_s0 = inlined_call_operand.vmem [shape: bf16[6,48,128], index: 0, kind: input, shape index: {}]   ;;  %s466_s1 = inlined_call_operand.vmem [shape: bf16[8,48], index: 1, kind: input, shape index: {}]   ;;  %s467_s2 = inlined_call_operand.vmem [shape: f32[8,1], index: 2, kind: input, shape index: {}]   ;;  %s468_s3 = inlined_call_operand.vmem [shape: bf16[6,8,128], index: 3, kind: output, shape index: {}]  }
   0x1   :  { %s430_s14 = smov 0  }
   0x2 LB: > { %s25_s15 = sadd.s32 1, %s399_s13  ;;  %p333_p0 = scmp.ge.s32.totalorder %s403_s14, 1  ;;  %s403_s14 = sphi %s430_s14, %s13_s14   ;;  %s399_s13 = sphi %s428_s13, %s470_s13   ;;  %s395_s12 = sphi %s426_s12, %s469_s12  }
   0x3   : > { %p27_p1 = scmp.ge.s32.totalorder %s25_s15, 6  ;;  %p156_p2 = scmp.lt.s32.totalorder %s403_s14, 7 }
   0x5   : > { %s472_s15 = smov (%p27_p1, %s25_s15), 0  ;;  %p157_p3 = pnand %p333_p0, %p156_p2 }
   0x6   : > { %p185_p4 = scmp.lt.s32.totalorder (!%p157_p3), %s395_s12, 5 }
   0x7   : > { %160 = sbr.rel (%p157_p3) target bundleno = 162 (0xa2), region = 32 }
   0xc   : > { %v208_v0 = vld [vmem:[%s467_s2] sm:$0xff]  ;;  %v405_v1 = vmov 0   ;;  %s474_s12 = smov (!%p185_p4, %s395_s12), 5  ;;  %vm232_vm0 = vcmask 392192  }
   0xd   : > { %380 = vset.pattern.permute.xlu0 %v405_v1  ;;  %s354_s18 = smul.u32 24, %s474_s12  ;;  %v201_v5 = vld [vmem:[%s466_s1] sm:$0xf]  ;;  %s335_s24 = sshll.u32 %s474_s12, 2 }
   0xe   : > { %211 = vperm.xlu0 %380, %v208_v0   ;;  %s199_s27 = scalar_lea.vmem %s468_s3, %s335_s24 }
   0xf   : > { %s192_s21 = scalar_lea.vmem %s465_s0, %s354_s18 }
  0x10   : > { %v353_v2 = vld [vmem:[%s192_s21 + $0x10] sm:$0xff]  ;;  %v352_v3 = vld [vmem:[%s192_s21 + $0x8] sm:$0xff]  ;;  %v351_v4 = vld [vmem:[%s192_s21] sm:$0xff] }
  0x11   : > { %241 = vmatpush.bf16.msra.mxu0 %v353_v2 }
  0x15   : > { %242 = vmatpush.bf16.msra.mxu0 %v352_v3 }
  0x19   : > { %243 = vmatpush.bf16.msra.mxu0 %v351_v4 }
  0x1c   : > { %348 = vmatmul.msk.bf16.vlgmr.msra.gmra.mxu0 %vm232_vm0, %v201_v5 }
  0x80   : > { %v212_v6 = vpop.permute.xlu0 %211 }
  0x99   : > { %v245_v7 = vpop.f32.mrf.mxu0 }
  0x9a   : > { %v246_v8 = vadd.f32 %v245_v7, %v212_v6 }
  0x9c   : > { %v249_v9 = vmax.f32 %v246_v8, 0.0 }
  0x9e   : > { %v250_v10 = vpack.c.bf16 %v249_v9, %v249_v9 }
  0xa0   : > { %251 = vst [vmem:[%s199_s27] sm:$0xf] %v250_v10 }
  0xa1   : > { %v247_v11 = vpop.f32.mrf.mxu0 }
  0xa2 PF: > { %s13_s14 = sadd.s32 1, %s403_s14   ;;  %s469_s12 = smov %s399_s13 }
  0xa3   : > { %p10_p5 = scmp.ge.s32.totalorder %s13_s14, 8   ;;  %s470_s13 = smov %s472_s15 }
  0xa5   :  { %12 = sbr.rel (!%p10_p5) target bundleno = 2 (0x2), region = 62 }

// kernel: custom-call.13
= control target key start
LH: loop header
LB: loop body
LE: loop exit
PB: predicated region body
PF: predicated region fallthrough
CT: control target
= control target key end

     0   :  { %s373_s6 = smov 0   ;;  %s375_s7 = smov 0   ;;  %s422_s0 = inlined_call_operand.vmem [shape: f32[2,1,3,3], index: 0, kind: input, shape index: {}]   ;;  %s423_s1 = inlined_call_operand.vmem [shape: f32[2,1,3,3], index: 1, kind: output, shape index: {}]  }
   0x1   :  { %s377_s8 = smov 0  }
   0x2 LB: > { %s299_s9 = sadd.s32 4294967295, %s360_s8   ;;  %s33_s10 = sadd.s32 1, %s356_s7  ;;  %s360_s8 = sphi %s377_s8, %s7_s8   ;;  %s356_s7 = sphi %s375_s7, %s425_s7   ;;  %s352_s6 = sphi %s373_s6, %s424_s6  }
   0x3   : > { %p35_p0 = scmp.ge.s32.totalorder %s33_s10, 2  ;;  %p301_p1 = scmp.ge.s32.totalorder %s360_s8, 2 }
   0x4   : > { %s49_s11 = sand.u32 (!%p301_p1), 1, %s360_s8   ;;  %s303_s12 = sshll.u32 (!%p301_p1), %s356_s7, 2 }
   0x5   : > { %s427_s10 = smov (%p35_p0, %s33_s10), 0  ;;  %47 = sbr.rel (%p301_p1) target bundleno = 12 (0xc), region = 16 }
   0x6   : > { %s302_s13 = sshll.u32 (!%p301_p1), %s49_s11, 2  ;;  %s56_s16 = scalar_lea.vmem (!%p301_p1), %s422_s0, %s303_s12 }
   0x7   : > { %s51_s17 = scalar_lea.vmem (!%p301_p1), [#allocation1], %s302_s13 }
   0xa   : > { %v73_v0 = vld [vmem:[%s56_s16] sm:$0xf] }
   0xb   : > { %74 = vst [vmem:[%s51_s17] sm:$0xf] %v73_v0 }
   0xc PF: > { %p304_p2 = scmp.ge.s32.totalorder %s360_s8, 1  ;;  %p91_p3 = scmp.lt.s32.totalorder %s360_s8, 3 }
   0xe   : > { %p92_p4 = pnand %p304_p2, %p91_p3 }
  0x10   : > { %95 = sbr.rel (%p92_p4) target bundleno = 437 (0x1b5), region = 50 }
  0x15   : > { %s400_s18 = sand.u32 1, %s299_s9   ;;  %v113_v1 = vlaneseq  ;;  %v362_v20 = vmov -1.0   ;;  %s308_s22 = sshll.u32 %s352_s6, 2 }
  0x16   : > { %s305_s19 = sshll.u32 %s400_s18, 2  ;;  %s206_s25 = scalar_lea.vmem %s423_s1, %s308_s22 }
  0x17   : > { %s104_s20 = scalar_lea.vmem [#allocation1], %s305_s19  ;;  %v114_v3 = vand.u32 127, %v113_v1  ;;  %v117_v4 = vshrl.u32 %v113_v1, 7  ;;  %s108_s21 = scalar_lea.vmem [#allocation3], %s305_s19 }
  0x18   : > { %v111_v2 = vld [vmem:[%s104_s20] sm:$0xf] }
  0x19   : > { %112 = vst [vmem:[#allocation0] sm:$0xf] %v111_v2  ;;  %vm119_vm0 = vcmp.eq.s32.totalorder %v117_v4, %v114_v3  ;;  %vm115_vm1 = vcmp.lt.s32.totalorder %v114_v3, 3  ;;  %vm124_vm2 = vcmp.ge.s32.totalorder %v117_v4, %v114_v3  ;;  %vm151_vm8 = vcmp.eq.s32.totalorder %v114_v3, 0 }
  0x1a   : > { %vm125_vm3 = vmand %vm124_vm2, %vm115_vm1  ;;  %vm148_vm9 = vcmp.eq.s32.totalorder %v114_v3, %v117_v4  ;;  %v152_v21 = vsel %vm151_vm8, 1.0, %v362_v20  ;;  %vm159_vm10 = vcmp.eq.s32.totalorder %v114_v3, 1  ;;  %vm169_vm11 = vcmp.eq.s32.totalorder %v114_v3, 2 }
  0x1b   : > { %v153_v22 = vsel %vm148_vm9, %v152_v21, 0.0 }
  0x20   : > { %v120_v5 = vld [vmem:[#allocation0] sm:$0xff] }
  0x21   : > { %v121_v6 = vsel %vm119_vm0, %v120_v5, 0.0  ;;  %v126_v15 = vsel %vm125_vm3, %v120_v5, 0.0 }
  0x22   : > { %122 = vadd.xlane.f32.xlu0 %v121_v6 }
  0x95   : > { %v123_v7 = vpop.xlane.xlu0 %122 }
  0x96   : > { %336 = vrcp.f32 %v123_v7  ;;  %v138_v11 = vand.u32 2147483648, %v123_v7  ;;  %v136_v13 = vand.u32 2147483647, %v123_v7  ;;  %vm132_vm5 = vweird.f32 %v123_v7 }
  0x98   : > { %v139_v16 = vor.u32 1.1754944e-38, %v138_v11  ;;  %vm137_vm7 = vcmp.eq.f32.partialorder %v136_v13, 8.507059e+37 }
  0x9c   : > { %v337_v8 = vpop.eup %336 }
  0x9d   : > { %v128_v9 = vmul.f32 %v337_v8, %v123_v7  ;;  %vm133_vm4 = vweird.f32 %v337_v8 }
  0x9e   : > { %vm134_vm6 = vmor %vm132_vm5, %vm133_vm4 }
  0x9f   : > { %v129_v10 = vsub.f32 1.0, %v128_v9 }
  0xa1   : > { %v130_v12 = vmul.f32 %v337_v8, %v129_v10 }
  0xa3   : > { %v131_v14 = vadd.f32 %v337_v8, %v130_v12 }
  0xa5   : > { %v135_v17 = vsel %vm134_vm6, %v337_v8, %v131_v14 }
  0xa6   : > { %v140_v18 = vsel %vm137_vm7, %v139_v16, %v135_v17 }
  0xa7   : > { %v141_v19 = vmul.f32 %v140_v18, %v126_v15 }
  0xa9   : > { %142 = vst [vmem:[#allocation4] sm:$0xff] %v141_v19 }
  0xb0   : > { %v155_v23 = vld [vmem:[#allocation4 + $0x1] ss:$0 sm:$0xff]  ;;  %v165_v26 = vld [vmem:[#allocation4 + $0x2] ss:$0 sm:$0xff] }
  0xb1   : > { %v156_v24 = vxor.u32 2147483648, %v155_v23  ;;  %v166_v28 = vxor.u32 2147483648, %v165_v26 }
  0xb3   : > { %v160_v25 = vmul.f32 %v156_v24, %v153_v22 }
  0xb5   : > { %161 = vadd.xlane.f32.xlu0 %v160_v25 }
 0x128   : > { %v162_v27 = vpop.xlane.xlu0 %161 }
 0x129   : > { %v163_v29 = vsel %vm159_vm10, %v162_v27, %v153_v22 }
 0x12a   : > { %v170_v30 = vmul.f32 %v166_v28, %v163_v29 }
 0x12c   : > { %171 = vadd.xlane.f32.xlu1 %v170_v30 }
 0x19f   : > { %v172_v31 = vpop.xlane.xlu1 %171 }
 0x1a0   : > { %v173_v32 = vsel %vm169_vm11, %v172_v31, %v163_v29 }
 0x1a1   : > { %v188_v33 = vmul.f32 %v173_v32, %v140_v18 }
 0x1a3   : > { %v190_v34 = vsel %vm132_vm5, %v173_v32, %v188_v33 }
 0x1a4   : > { %191 = vst [vmem:[#allocation2] sm:$0xff] %v190_v34 }
 0x1ab   : > { %v194_v35 = vld [vmem:[#allocation2] sm:$0xf] }
 0x1ac   : > { %197 = vst [vmem:[%s108_s21] sm:$0xf] %v194_v35 }
 0x1b3   : > { %v223_v36 = vld [vmem:[%s108_s21] sm:$0xf] }
 0x1b4   : > { %224 = vst [vmem:[%s206_s25] sm:$0xf] %v223_v36 }
 0x1b5 PF: > { %s7_s8 = sadd.s32 1, %s360_s8   ;;  %s424_s6 = smov %s356_s7 }
 0x1b6   : > { %p4_p5 = scmp.ge.s32.totalorder %s7_s8, 4   ;;  %s425_s7 = smov %s427_s10 }
 0x1b8   :  { %6 = sbr.rel (!%p4_p5) target bundleno = 2 (0x2), region = 112 }

// kernel: custom-call.12
= control target key start
LH: loop header
LB: loop body
LE: loop exit
PB: predicated region body
PF: predicated region fallthrough
CT: control target
= control target key end

     0   :  { %s372_s6 = smov 0   ;;  %s374_s7 = smov 0   ;;  %s421_s0 = inlined_call_operand.vmem [shape: f32[2,1,3,3], index: 0, kind: input, shape index: {}]   ;;  %s422_s1 = inlined_call_operand.vmem [shape: f32[2,1,3,3], index: 1, kind: output, shape index: {}]  }
   0x1   :  { %s376_s8 = smov 0  }
   0x2 LB: > { %s298_s9 = sadd.s32 4294967295, %s359_s8   ;;  %s33_s10 = sadd.s32 1, %s355_s7  ;;  %s359_s8 = sphi %s376_s8, %s7_s8   ;;  %s355_s7 = sphi %s374_s7, %s424_s7   ;;  %s351_s6 = sphi %s372_s6, %s423_s6  }
   0x3   : > { %p35_p0 = scmp.ge.s32.totalorder %s33_s10, 2  ;;  %p300_p1 = scmp.ge.s32.totalorder %s359_s8, 2 }
   0x4   : > { %s49_s11 = sand.u32 (!%p300_p1), 1, %s359_s8   ;;  %s302_s12 = sshll.u32 (!%p300_p1), %s355_s7, 2 }
   0x5   : > { %s426_s10 = smov (%p35_p0, %s33_s10), 0  ;;  %47 = sbr.rel (%p300_p1) target bundleno = 12 (0xc), region = 16 }
   0x6   : > { %s301_s13 = sshll.u32 (!%p300_p1), %s49_s11, 2  ;;  %s56_s16 = scalar_lea.vmem (!%p300_p1), %s421_s0, %s302_s12 }
   0x7   : > { %s51_s17 = scalar_lea.vmem (!%p300_p1), [#allocation1], %s301_s13 }
   0xa   : > { %v73_v0 = vld [vmem:[%s56_s16] sm:$0xf] }
   0xb   : > { %74 = vst [vmem:[%s51_s17] sm:$0xf] %v73_v0 }
   0xc PF: > { %p303_p2 = scmp.ge.s32.totalorder %s359_s8, 1  ;;  %p91_p3 = scmp.lt.s32.totalorder %s359_s8, 3 }
   0xe   : > { %p92_p4 = pnand %p303_p2, %p91_p3 }
  0x10   : > { %95 = sbr.rel (%p92_p4) target bundleno = 437 (0x1b5), region = 50 }
  0x15   : > { %s399_s18 = sand.u32 1, %s298_s9   ;;  %v113_v1 = vlaneseq  ;;  %v361_v20 = vmov -1.0   ;;  %s307_s22 = sshll.u32 %s351_s6, 2 }
  0x16   : > { %s304_s19 = sshll.u32 %s399_s18, 2  ;;  %s205_s25 = scalar_lea.vmem %s422_s1, %s307_s22 }
  0x17   : > { %s104_s20 = scalar_lea.vmem [#allocation1], %s304_s19  ;;  %v114_v3 = vand.u32 127, %v113_v1  ;;  %v117_v4 = vshrl.u32 %v113_v1, 7  ;;  %s108_s21 = scalar_lea.vmem [#allocation3], %s304_s19 }
  0x18   : > { %v111_v2 = vld [vmem:[%s104_s20] sm:$0xf] }
  0x19   : > { %112 = vst [vmem:[#allocation0] sm:$0xf] %v111_v2  ;;  %vm119_vm0 = vcmp.eq.s32.totalorder %v117_v4, %v114_v3  ;;  %vm115_vm1 = vcmp.lt.s32.totalorder %v114_v3, 3  ;;  %vm124_vm2 = vcmp.le.s32.totalorder %v117_v4, %v114_v3  ;;  %vm151_vm8 = vcmp.eq.s32.totalorder %v114_v3, 2 }
  0x1a   : > { %vm125_vm3 = vmand %vm124_vm2, %vm115_vm1  ;;  %vm148_vm9 = vcmp.eq.s32.totalorder %v114_v3, %v117_v4  ;;  %v152_v21 = vsel %vm151_vm8, 1.0, %v361_v20  ;;  %vm159_vm10 = vcmp.eq.s32.totalorder %v114_v3, 1  ;;  %vm168_vm11 = vcmp.eq.s32.totalorder %v114_v3, 0 }
  0x1b   : > { %v153_v22 = vsel %vm148_vm9, %v152_v21, 0.0 }
  0x20   : > { %v120_v5 = vld [vmem:[#allocation0] sm:$0xff] }
  0x21   : > { %v121_v6 = vsel %vm119_vm0, %v120_v5, 0.0  ;;  %v126_v15 = vsel %vm125_vm3, %v120_v5, 0.0 }
  0x22   : > { %122 = vadd.xlane.f32.xlu0 %v121_v6 }
  0x95   : > { %v123_v7 = vpop.xlane.xlu0 %122 }
  0x96   : > { %335 = vrcp.f32 %v123_v7  ;;  %v138_v11 = vand.u32 2147483648, %v123_v7  ;;  %v136_v13 = vand.u32 2147483647, %v123_v7  ;;  %vm132_vm5 = vweird.f32 %v123_v7 }
  0x98   : > { %v139_v16 = vor.u32 1.1754944e-38, %v138_v11  ;;  %vm137_vm7 = vcmp.eq.f32.partialorder %v136_v13, 8.507059e+37 }
  0x9c   : > { %v336_v8 = vpop.eup %335 }
  0x9d   : > { %v128_v9 = vmul.f32 %v336_v8, %v123_v7  ;;  %vm133_vm4 = vweird.f32 %v336_v8 }
  0x9e   : > { %vm134_vm6 = vmor %vm132_vm5, %vm133_vm4 }
  0x9f   : > { %v129_v10 = vsub.f32 1.0, %v128_v9 }
  0xa1   : > { %v130_v12 = vmul.f32 %v336_v8, %v129_v10 }
  0xa3   : > { %v131_v14 = vadd.f32 %v336_v8, %v130_v12 }
  0xa5   : > { %v135_v17 = vsel %vm134_vm6, %v336_v8, %v131_v14 }
  0xa6   : > { %v140_v18 = vsel %vm137_vm7, %v139_v16, %v135_v17 }
  0xa7   : > { %v141_v19 = vmul.f32 %v140_v18, %v126_v15 }
  0xa9   : > { %142 = vst [vmem:[#allocation4] sm:$0xff] %v141_v19 }
  0xb0   : > { %v155_v23 = vld [vmem:[#allocation4 + $0x1] ss:$0 sm:$0xff]  ;;  %v164_v26 = vld [vmem:[#allocation4] ss:$0 sm:$0xff] }
  0xb1   : > { %v156_v24 = vxor.u32 2147483648, %v155_v23  ;;  %v165_v28 = vxor.u32 2147483648, %v164_v26 }
  0xb3   : > { %v160_v25 = vmul.f32 %v156_v24, %v153_v22 }
  0xb5   : > { %161 = vadd.xlane.f32.xlu0 %v160_v25 }
 0x128   : > { %v162_v27 = vpop.xlane.xlu0 %161 }
 0x129   : > { %v163_v29 = vsel %vm159_vm10, %v162_v27, %v153_v22 }
 0x12a   : > { %v169_v30 = vmul.f32 %v165_v28, %v163_v29 }
 0x12c   : > { %170 = vadd.xlane.f32.xlu1 %v169_v30 }
 0x19f   : > { %v171_v31 = vpop.xlane.xlu1 %170 }
 0x1a0   : > { %v172_v32 = vsel %vm168_vm11, %v171_v31, %v163_v29 }
 0x1a1   : > { %v187_v33 = vmul.f32 %v172_v32, %v140_v18 }
 0x1a3   : > { %v189_v34 = vsel %vm132_vm5, %v172_v32, %v187_v33 }
 0x1a4   : > { %190 = vst [vmem:[#allocation2] sm:$0xff] %v189_v34 }
 0x1ab   : > { %v193_v35 = vld [vmem:[#allocation2] sm:$0xf] }
 0x1ac   : > { %196 = vst [vmem:[%s108_s21] sm:$0xf] %v193_v35 }
 0x1b3   : > { %v222_v36 = vld [vmem:[%s108_s21] sm:$0xf] }
 0x1b4   : > { %223 = vst [vmem:[%s205_s25] sm:$0xf] %v222_v36 }
 0x1b5 PF: > { %s7_s8 = sadd.s32 1, %s359_s8   ;;  %s423_s6 = smov %s355_s7 }
 0x1b6   : > { %p4_p5 = scmp.ge.s32.totalorder %s7_s8, 4   ;;  %s424_s7 = smov %s426_s10 }
 0x1b8   :  { %6 = sbr.rel (!%p4_p5) target bundleno = 2 (0x2), region = 111 }

// kernel: magnet_f_forward.3
= control target key start
LH: loop header
LB: loop body
LE: loop exit
PB: predicated region body
PF: predicated region fallthrough
CT: control target
= control target key end

     0   :  { %8 = vsyncpa [#allocation3], 0  ;;  %s748_s12 = smov 0   ;;  %s750_s13 = smov 0   ;;  %s855_s0 = inlined_call_operand.vmem [shape: f32[4], index: 0, kind: input, shape index: {}]   ;;  %s856_s1 = inlined_call_operand.vmem [shape: bf16[2,8,128], index: 1, kind: input, shape index: {}]   ;;  %s857_s2 = inlined_call_operand.vmem [shape: bf16[2,2,8,8,128], index: 2, kind: input, shape index: {}]   ;;  %s858_s3 = inlined_call_operand.vmem [shape: f32[2,8,128], index: 3, kind: output, shape index: {}]  }
   0x1   :  { %s752_s14 = smov 0  }
   0x2 LB: > { %s619_s15 = sadd.s32 4294967295, %s725_s14   ;;  %s33_s16 = sadd.s32 1, %s721_s13  ;;  %s725_s14 = sphi %s752_s14, %s14_s14   ;;  %s721_s13 = sphi %s750_s13, %s860_s13   ;;  %s717_s12 = sphi %s748_s12, %s859_s12  }
   0x3   : > { %p35_p0 = scmp.ge.s32.totalorder %s33_s16, 2  ;;  %p621_p1 = scmp.ge.s32.totalorder %s725_s14, 1 }
   0x4   : > { %p147_p2 = scmp.lt.s32.totalorder %s725_s14, 3  ;;  %p657_p4 = scmp.eq.s32.totalorder %s619_s15, 0 }
   0x5   : > { %s862_s16 = smov (%p35_p0, %s33_s16), 0  ;;  %s159_s19 = sshll.u32 %s855_s0, 4  ;;  %s160_s19 = int_to_ptr.vmem [resolvable:$true] %s159_s19 }
   0x6   : > { %p148_p3 = pnand %p621_p1, %p147_p2  ;;  %s727_s20 = smov [#allocation2]  }
   0x8   : > { %p653_p5 = pneg %p148_p3  ;;  %198 = sbr.rel (%p148_p3) target bundleno = 76 (0x4c), region = 32 }
   0xa   : > { %p654_p6 = pnand %p657_p4, %p653_p5 }
   0xc   : > { %656 = dma.vmem_to_smem (!%p654_p6), %s160_s19, 16, %s727_s20, [#allocation3]  }
   0xd   : > { %712 = dma.done.wait (%p657_p4), [#allocation3], 16  }
   0xe   : > { %714 = vsyncadd (%p657_p4), [#allocation3], 4294967280 }
   0xf   : > { %205 = sfence }
  0x10   : > { %p243_p7 = scmp.lt.s32.totalorder %s717_s12, 1  ;;  %vm372_vm0 = vcmask 1040384   ;;  %vm374_vm1 = vcmask 1041408   ;;  %vm376_vm2 = vcmask 1042432   ;;  %vm378_vm3 = vcmask 1043456   ;;  %s630_s30 = sshll.u32 %s717_s12, 1 }
  0x11   : > { %vm380_vm4 = vcmask 1044480   ;;  %vm382_vm5 = vcmask 1045504   ;;  %s389_s4 = sadd.s32 1, %s630_s30  ;;  %s825_s5 = sld [smem:[#allocation2 + %s630_s30]]  ;;  %vm384_vm6 = vcmask 1046528  }
  0x12   : > { %s774_s21 = scalar_select %p243_p7, %s717_s12, 1 }
  0x13   : > { %s390_s6 = sld [smem:[#allocation2 + %s389_s4]] }
  0x14   : > { %s626_s22 = sshll.u32 %s774_s21, 2  ;;  %s648_s23 = sshll.u32 %s774_s21, 6 }
  0x15   : > { %s249_s26 = scalar_lea.vmem %s856_s1, %s626_s22  ;;  %s784_s29 = scalar_lea.vmem %s857_s2, %s648_s23 }
  0x16   : > { %v273_v0 = vld [vmem:[%s249_s26] sm:$0xf]  ;;  %v632_v2 = vld [vmem:[%s784_s29 + $0x8] sm:$0xff]   ;;  %v634_v7 = vld [vmem:[%s784_s29 + $0x10] sm:$0xff]   ;;  %s629_s7 = sshll.u32 %s774_s21, 3 }
  0x17   : > { %v276_v1 = vld [vmem:[%s784_s29] sm:$0xff]   ;;  %v788_v3 = vunpack.c.l.bf16 %v273_v0  ;;  %v302_v6 = vunpack.c.l.bf16 %v632_v2  ;;  %v636_v8 = vld [vmem:[%s784_s29 + $0x18] sm:$0xff]   ;;  %v314_v9 = vunpack.c.h.bf16 %v632_v2  ;;  %v326_v10 = vunpack.c.l.bf16 %v634_v7  ;;  %s272_s10 = scalar_lea.vmem %s858_s3, %s629_s7 }
  0x18   : > { %v278_v4 = vunpack.c.l.bf16 %v276_v1  ;;  %v290_v5 = vunpack.c.h.bf16 %v276_v1  ;;  %v338_v11 = vunpack.c.h.bf16 %v634_v7  ;;  %v350_v12 = vunpack.c.l.bf16 %v636_v8 }
  0x19   : > { %v303_v15 = vmul.f32 %v302_v6, %v788_v3  ;;  %v362_v16 = vunpack.c.h.bf16 %v636_v8  ;;  %v315_v17 = vmul.f32 %v314_v9, %v788_v3  ;;  %v327_v18 = vmul.f32 %v326_v10, %v788_v3 }
  0x1a   : > { %v279_v13 = vmul.f32 %v278_v4, %v788_v3  ;;  %v291_v14 = vmul.f32 %v290_v5, %v788_v3  ;;  %v339_v19 = vmul.f32 %v338_v11, %v788_v3  ;;  %v351_v20 = vmul.f32 %v350_v12, %v788_v3  ;;  %v638_v11 = vld [vmem:[%s784_s29 + $0x20] sm:$0xff]  }
  0x1b   : > { %v304_v23 = vpack.c.bf16 %v303_v15, %v303_v15  ;;  %v363_v24 = vmul.f32 %v362_v16, %v788_v3  ;;  %v316_v25 = vpack.c.bf16 %v315_v17, %v315_v17  ;;  %v328_v26 = vpack.c.bf16 %v327_v18, %v327_v18  ;;  %v640_v15 = vld [vmem:[%s784_s29 + $0x28] sm:$0xff]  }
  0x1c   : > { %v280_v21 = vpack.c.bf16 %v279_v13, %v279_v13  ;;  %v292_v22 = vpack.c.bf16 %v291_v14, %v291_v14  ;;  %v340_v27 = vpack.c.bf16 %v339_v19, %v339_v19  ;;  %v352_v28 = vpack.c.bf16 %v351_v20, %v351_v20  ;;  %v642_v19 = vld [vmem:[%s784_s29 + $0x30] sm:$0xff]  }
  0x1d   : > { %v305_v31 = vunpack.c.l.bf16 %v304_v23  ;;  %v364_v32 = vpack.c.bf16 %v363_v24, %v363_v24  ;;  %v317_v33 = vunpack.c.l.bf16 %v316_v25  ;;  %v329_v34 = vunpack.c.l.bf16 %v328_v26 }
  0x1e   : > { %v281_v29 = vunpack.c.l.bf16 %v280_v21  ;;  %v293_v30 = vunpack.c.l.bf16 %v292_v22  ;;  %v341_v35 = vunpack.c.l.bf16 %v340_v27  ;;  %v353_v36 = vunpack.c.l.bf16 %v352_v28 }
  0x1f   : > { %v306_v39 = vrot.slane %v305_v31, 4  ;;  %v365_v40 = vunpack.c.l.bf16 %v364_v32  ;;  %v318_v41 = vrot.slane %v317_v33, 4  ;;  %v330_v42 = vrot.slane %v329_v34, 4 }
  0x20   : > { %v282_v37 = vrot.slane %v281_v29, 4  ;;  %v294_v38 = vrot.slane %v293_v30, 4  ;;  %v342_v43 = vrot.slane %v341_v35, 4  ;;  %v354_v44 = vrot.slane %v353_v36, 4 }
  0x21   : > { %v307_v47 = vadd.f32 %v306_v39, %v305_v31  ;;  %v366_v48 = vrot.slane %v365_v40, 4  ;;  %v319_v49 = vadd.f32 %v318_v41, %v317_v33  ;;  %v331_v50 = vadd.f32 %v330_v42, %v329_v34 }
  0x22   : > { %v283_v45 = vadd.f32 %v282_v37, %v281_v29  ;;  %v295_v46 = vadd.f32 %v294_v38, %v293_v30  ;;  %v343_v51 = vadd.f32 %v342_v43, %v341_v35  ;;  %v355_v52 = vadd.f32 %v354_v44, %v353_v36  ;;  %v644_v44 = vld [vmem:[%s784_s29 + $0x38] sm:$0xff]  }
  0x23   : > { %v308_v55 = vrot.slane %v307_v47, 2  ;;  %v367_v56 = vadd.f32 %v366_v48, %v365_v40  ;;  %v320_v57 = vrot.slane %v319_v49, 2  ;;  %v332_v58 = vrot.slane %v331_v50, 2 }
  0x24   : > { %v284_v53 = vrot.slane %v283_v45, 2  ;;  %v296_v54 = vrot.slane %v295_v46, 2  ;;  %v344_v59 = vrot.slane %v343_v51, 2  ;;  %v356_v60 = vrot.slane %v355_v52, 2 }
  0x25   : > { %v309_v63 = vadd.f32 %v308_v55, %v307_v47  ;;  %v321_v0 = vadd.f32 %v320_v57, %v319_v49  ;;  %v333_v1 = vadd.f32 %v332_v58, %v331_v50  ;;  %v368_v4 = vrot.slane %v367_v56, 2 }
  0x26   : > { %v285_v61 = vadd.f32 %v284_v53, %v283_v45  ;;  %v297_v62 = vadd.f32 %v296_v54, %v295_v46  ;;  %v345_v2 = vadd.f32 %v344_v59, %v343_v51  ;;  %v357_v8 = vadd.f32 %v356_v60, %v355_v52 }
  0x27   : > { %v310_v7 = vrot.slane %v309_v63, 1  ;;  %v322_v9 = vrot.slane %v321_v0, 1  ;;  %v334_v10 = vrot.slane %v333_v1, 1  ;;  %v802_v18 = vadd.f32 %v368_v4, %v367_v56 }
  0x28   : > { %v286_v5 = vrot.slane %v285_v61, 1  ;;  %v298_v6 = vrot.slane %v297_v62, 1  ;;  %v346_v17 = vrot.slane %v345_v2, 1  ;;  %v358_v21 = vrot.slane %v357_v8, 1 }
  0x29   : > { %v311_v14 = vadd.f32 %v310_v7, %v309_v63  ;;  %v323_v16 = vadd.f32 %v322_v9, %v321_v0  ;;  %v335_v20 = vadd.f32 %v334_v10, %v333_v1  ;;  %v393_v23 = vunpack.c.l.bf16 %v638_v11 }
  0x2a   : > { %v287_v12 = vadd.f32 %v286_v5, %v285_v61  ;;  %v299_v13 = vadd.f32 %v298_v6, %v297_v62  ;;  %v405_v25 = vunpack.c.h.bf16 %v638_v11  ;;  %v417_v26 = vunpack.c.l.bf16 %v640_v15 }
  0x2b   : > { %v429_v27 = vunpack.c.h.bf16 %v640_v15  ;;  %v394_v29 = vmul.f32 %v393_v23, %v788_v3  ;;  %v441_v30 = vunpack.c.l.bf16 %v642_v19  ;;  %v453_v31 = vunpack.c.h.bf16 %v642_v19 }
  0x2c   : > { %v373_v22 = vsel %vm372_vm0, %v287_v12, %v299_v13  ;;  %v347_v32 = vadd.f32 %v346_v17, %v345_v2  ;;  %v406_v33 = vmul.f32 %v405_v25, %v788_v3  ;;  %v418_v34 = vmul.f32 %v417_v26, %v788_v3 }
  0x2d   : > { %v375_v24 = vsel %vm374_vm1, %v373_v22, %v311_v14  ;;  %v430_v35 = vmul.f32 %v429_v27, %v788_v3  ;;  %v395_v37 = vpack.c.bf16 %v394_v29, %v394_v29  ;;  %v442_v38 = vmul.f32 %v441_v30, %v788_v3 }
  0x2e   : > { %v377_v28 = vsel %vm376_vm2, %v375_v24, %v323_v16  ;;  %v454_v39 = vmul.f32 %v453_v31, %v788_v3  ;;  %v370_v40 = vrot.slane %v802_v18, 1  ;;  %v407_v41 = vpack.c.bf16 %v406_v33, %v406_v33 }
  0x2f   : > { %v379_v36 = vsel %vm378_vm3, %v377_v28, %v335_v20  ;;  %v419_v42 = vpack.c.bf16 %v418_v34, %v418_v34  ;;  %v431_v43 = vpack.c.bf16 %v430_v35, %v430_v35  ;;  %v817_v45 = vadd.f32 %v358_v21, %v357_v8 }
  0x30   : > { %v396_v46 = vunpack.c.l.bf16 %v395_v37  ;;  %v443_v47 = vpack.c.bf16 %v442_v38, %v442_v38  ;;  %v455_v48 = vpack.c.bf16 %v454_v39, %v454_v39  ;;  %v820_v49 = vsel %vm380_vm4, %v379_v36, %v347_v32 }
  0x31   : > { %v408_v50 = vunpack.c.l.bf16 %v407_v41  ;;  %v420_v51 = vunpack.c.l.bf16 %v419_v42  ;;  %v432_v52 = vunpack.c.l.bf16 %v431_v43  ;;  %v465_v56 = vunpack.c.l.bf16 %v644_v44 }
  0x32   : > { %v397_v53 = vrot.slane %v396_v46, 4  ;;  %v444_v54 = vunpack.c.l.bf16 %v443_v47  ;;  %v456_v55 = vunpack.c.l.bf16 %v455_v48  ;;  %v477_v60 = vunpack.c.h.bf16 %v644_v44 }
  0x33   : > { %v409_v57 = vrot.slane %v408_v50, 4  ;;  %v421_v58 = vrot.slane %v420_v51, 4  ;;  %v433_v59 = vrot.slane %v432_v52, 4  ;;  %v466_v0 = vmul.f32 %v465_v56, %v788_v3 }
  0x34   : > { %v398_v61 = vadd.f32 %v397_v53, %v396_v46  ;;  %v445_v62 = vrot.slane %v444_v54, 4  ;;  %v457_v63 = vrot.slane %v456_v55, 4  ;;  %v478_v5 = vmul.f32 %v477_v60, %v788_v3 }
  0x35   : > { %v410_v1 = vadd.f32 %v409_v57, %v408_v50  ;;  %v422_v2 = vadd.f32 %v421_v58, %v420_v51  ;;  %v434_v4 = vadd.f32 %v433_v59, %v432_v52  ;;  %v467_v9 = vpack.c.bf16 %v466_v0, %v466_v0 }
  0x36   : > { %v399_v6 = vrot.slane %v398_v61, 2  ;;  %v446_v7 = vadd.f32 %v445_v62, %v444_v54  ;;  %v458_v8 = vadd.f32 %v457_v63, %v456_v55  ;;  %v479_v13 = vpack.c.bf16 %v478_v5, %v478_v5 }
  0x37   : > { %v411_v10 = vrot.slane %v410_v1, 2  ;;  %v423_v11 = vrot.slane %v422_v2, 2  ;;  %v435_v12 = vrot.slane %v434_v4, 2  ;;  %v468_v17 = vunpack.c.l.bf16 %v467_v9 }
  0x38   : > { %v400_v14 = vadd.f32 %v399_v6, %v398_v61  ;;  %v447_v15 = vrot.slane %v446_v7, 2  ;;  %v459_v16 = vrot.slane %v458_v8, 2  ;;  %v480_v22 = vunpack.c.l.bf16 %v479_v13 }
  0x39   : > { %v412_v19 = vadd.f32 %v411_v10, %v410_v1  ;;  %v424_v20 = vadd.f32 %v423_v11, %v422_v2  ;;  %v436_v21 = vadd.f32 %v435_v12, %v434_v4  ;;  %v469_v25 = vrot.slane %v468_v17, 4 }
  0x3a   : > { %v401_v23 = vrot.slane %v400_v14, 1  ;;  %v448_v3 = vadd.f32 %v447_v15, %v446_v7  ;;  %v460_v24 = vadd.f32 %v459_v16, %v458_v8  ;;  %v481_v29 = vrot.slane %v480_v22, 4 }
  0x3b   : > { %v413_v26 = vrot.slane %v412_v19, 1  ;;  %v425_v27 = vrot.slane %v424_v20, 1  ;;  %v437_v28 = vrot.slane %v436_v21, 1  ;;  %v470_v33 = vadd.f32 %v469_v25, %v468_v17 }
  0x3c   : > { %v402_v30 = vadd.f32 %v401_v23, %v400_v14  ;;  %v449_v31 = vrot.slane %v448_v3, 1  ;;  %v461_v32 = vrot.slane %v460_v24, 1  ;;  %v482_v37 = vadd.f32 %v481_v29, %v480_v22 }
  0x3d   : > { %v414_v34 = vadd.f32 %v413_v26, %v412_v19  ;;  %v426_v35 = vadd.f32 %v425_v27, %v424_v20  ;;  %v438_v36 = vadd.f32 %v437_v28, %v436_v21  ;;  %v471_v39 = vrot.slane %v470_v33, 2 }
  0x3e   : > { %v450_v38 = vadd.f32 %v449_v31, %v448_v3  ;;  %v371_v41 = vadd.f32 %v370_v40, %v802_v18  ;;  %v462_v42 = vadd.f32 %v461_v32, %v460_v24  ;;  %v483_v43 = vrot.slane %v482_v37, 2 }
  0x3f   : > { %v487_v44 = vsel %vm372_vm0, %v402_v30, %v414_v34  ;;  %v383_v46 = vsel %vm382_vm5, %v820_v49, %v817_v45  ;;  %v472_v47 = vadd.f32 %v471_v39, %v470_v33  ;;  %v386_v40 = vstv %s825_s5 }
  0x40   : > { %v488_v48 = vsel %vm374_vm1, %v487_v44, %v426_v35  ;;  %v484_v50 = vadd.f32 %v483_v43, %v482_v37  ;;  %v385_v18 = vsel %vm384_vm6, %v383_v46, %v371_v41  ;;  %v494_v58 = vstv %s390_s6 }
  0x41   : > { %v489_v51 = vsel %vm376_vm2, %v488_v48, %v438_v36  ;;  %v473_v52 = vrot.slane %v472_v47, 1  ;;  %v387_v45 = vmul.f32 %v386_v40, %v385_v18 }
  0x42   : > { %v490_v53 = vsel %vm378_vm3, %v489_v51, %v450_v38  ;;  %v485_v54 = vrot.slane %v484_v50, 1 }
  0x43   : > { %v491_v55 = vsel %vm380_vm4, %v490_v53, %v462_v42  ;;  %v474_v56 = vadd.f32 %v473_v52, %v472_v47 }
  0x44   : > { %v486_v57 = vadd.f32 %v485_v54, %v484_v50 }
  0x45   : > { %v492_v49 = vsel %vm382_vm5, %v491_v55, %v474_v56 }
  0x46   : > { %v493_v59 = vsel %vm384_vm6, %v492_v49, %v486_v57 }
  0x47   : > { %v495_v60 = vmul.f32 %v494_v58, %v493_v59 }
  0x49   : > { %v496_v61 = vadd.f32 %v495_v60, %v387_v45 }
  0x4b   : > { %497 = vst [vmem:[%s272_s10] sm:$0xff] %v496_v61 }
  0x4c PF: > { %s14_s14 = sadd.s32 1, %s725_s14   ;;  %s859_s12 = smov %s721_s13 }
  0x4d   : > { %p11_p8 = scmp.ge.s32.totalorder %s14_s14, 4   ;;  %s860_s13 = smov %s862_s16 }
  0x4f   :  { %13 = sbr.rel (!%p11_p8) target bundleno = 2 (0x2), region = 85 }
  0x54   :  { %529 = vsyncpa [#allocation3], 1 }
  0x55   :  { %531 = vsyncpa [#allocation3 + $0x1], 1 }

</bundles_post_ra>
